<compile_context>
chip_gen: v7x
topology: tpu7x:2x2x1
jax: 0.10.0
libtpu: 0.0.40
codegen_flags: <defaults>
</compile_context>

<pallas_src>
import functools

import numpy as np
import jax
import jax.numpy as jnp
from jax import lax
from jax.experimental import pallas as pl
from jax.experimental.pallas import tpu as pltpu

# ---- static module configuration (matches TopoInter_Loss.__init__) ----------
DIM = 2
CONNECTIVITY = 4
MIN_THICK = 1
INCLUSION = [[1, 2]]   # class 1 is completely surrounded by class 2
EXCLUSION = [[1, 3]]   # classes 1 and 3 exclude each other
INTERACTIONS = tuple([(True, a, b) for a, b in INCLUSION] +
                     [(False, a, b) for a, b in EXCLUSION])


def _topo_ce_kernel(x_ref, y_ref, out_ref, *, num_classes, width, interactions,
                    use_roll):
    """One grid step: (1, C, H, Wf) logits block, Wf = n_img * width."""
    C = num_classes
    H = x_ref.shape[2]
    Wf = x_ref.shape[3]
    W = width
    n_img = Wf // W

    y = y_ref[0]

    # ---- fused argmax + online log-sum-exp over the class axis -------------
    # softmax is monotone, so argmax(softmax(x)) == argmax(x); the CE term is
    # logsumexp(x) - x[y] (no ignore_index handling, same as the reference).
    x0 = x_ref[0, 0].astype(jnp.float32)
    best = x0                                   # running max over classes
    P = jnp.zeros((H, Wf), jnp.int32)           # running argmax
    sum_exp = jnp.ones((H, Wf), jnp.float32)    # running sum of exp(x_c - best)
    x_at_y = jnp.where(y == 0, x0, 0.0)         # x gathered at the GT label
    for c in range(1, C):
        xc = x_ref[0, c].astype(jnp.float32)
        take = xc > best                        # strict '>' == first-max ties
        new_best = jnp.where(take, xc, best)
        sum_exp = sum_exp * jnp.exp(best - new_best) + jnp.exp(xc - new_best)
        P = jnp.where(take, jnp.int32(c), P)
        best = new_best
        x_at_y = x_at_y + jnp.where(y == c, xc, 0.0)
    ce = best + jnp.log(sum_exp) - x_at_y       # per-pixel cross entropy

    # ---- connectivity-4 dilation: (3x3 cross conv >= 1) ---------------------
    if use_roll:
        # Shifted copies via XLU rotates + tap-validity masks.  The validity
        # masks are derived from the *rolled* index maps, so they are correct
        # regardless of the rotate direction convention, kill the circular
        # wrap-around, and stop taps from leaking across folded images.
        row = lax.broadcasted_iota(jnp.int32, (H, Wf), 0)
        col = lax.broadcasted_iota(jnp.int32, (H, Wf), 1)

        not_start = jnp.ones((H, Wf), jnp.bool_)   # not first col of an image
        not_end = jnp.ones((H, Wf), jnp.bool_)     # not last  col of an image
        for b in range(n_img):
            not_start = jnp.logical_and(not_start, col != b * W)
            not_end = jnp.logical_and(not_end, col != b * W + (W - 1))

        def col_valid(shift):
            src = pltpu.roll(col, shift, axis=1)
            left_ok = jnp.logical_and(src == col - 1, not_start)
            right_ok = jnp.logical_and(src == col + 1, not_end)
            return jnp.logical_or(left_ok, right_ok).astype(jnp.float32)

        def row_valid(shift):
            src = pltpu.roll(row, shift, axis=0)
            return jnp.logical_or(src == row - 1,
                                  src == row + 1).astype(jnp.float32)

        v_r1 = row_valid(1)
        v_r2 = row_valid(H - 1)
        v_c1 = col_valid(1)
        v_c2 = col_valid(Wf - 1)

        def dilate(m):          # m: (H, Wf) f32 0/1 mask
            t = jnp.maximum(pltpu.roll(m, 1, axis=0) * v_r1,
                            pltpu.roll(m, H - 1, axis=0) * v_r2)
            t = jnp.maximum(t, pltpu.roll(m, 1, axis=1) * v_c1)
            t = jnp.maximum(t, pltpu.roll(m, Wf - 1, axis=1) * v_c2)
            return jnp.maximum(m, t)
    else:
        # Fallback: banded-matmul dilation conv = T_H @ m + m @ T_W - m, in
        # bf16 on the MXU (masks are 0/1 so bf16 is exact; accumulate in f32).
        # The W-side band is zeroed across folded-image boundaries.
        ih = lax.broadcasted_iota(jnp.int32, (H, H), 0)
        jh = lax.broadcasted_iota(jnp.int32, (H, H), 1)
        t_h = (jnp.abs(ih - jh) <= 1).astype(jnp.bfloat16)
        iw = lax.broadcasted_iota(jnp.int32, (Wf, Wf), 0)
        jw = lax.broadcasted_iota(jnp.int32, (Wf, Wf), 1)
        band_w = jnp.abs(iw - jw) <= 1
        for b in range(1, n_img):
            band_w = jnp.logical_and(
                band_w,
                jnp.logical_not(jnp.logical_and(iw == b * W - 1, jw == b * W)))
            band_w = jnp.logical_and(
                band_w,
                jnp.logical_not(jnp.logical_and(iw == b * W, jw == b * W - 1)))
        t_w = band_w.astype(jnp.bfloat16)

        def dilate(m):          # m: (H, Wf) f32 0/1 mask
            mb = m.astype(jnp.bfloat16)
            conv = (jnp.dot(t_h, mb, preferred_element_type=jnp.float32)
                    + jnp.dot(mb, t_w, preferred_element_type=jnp.float32)
                    - m)
            return (conv >= 1.0).astype(jnp.float32)

    # ---- critical-pixel map; shared masks/dilations computed only once -----
    mask_cache = {}
    dil_cache = {}

    def get_mask(key):
        if key not in mask_cache:
            if key[0] == 'lbl':
                mask_cache[key] = (P == key[1]).astype(jnp.float32)
            else:               # inclusion complement: not (P==C or P==A)
                _, a, c_lbl = key
                mask_cache[key] = jnp.logical_not(
                    jnp.logical_or(P == c_lbl, P == a)).astype(jnp.float32)
        return mask_cache[key]

    def get_dilated(key):
        if key not in dil_cache:
            dil_cache[key] = dilate(get_mask(key))
        return dil_cache[key]

    crit = jnp.zeros((H, Wf), jnp.float32)
    for (is_inclusion, label_a, label_c) in interactions:
        key_a = ('lbl', label_a)
        key_c = ('inc', label_a, label_c) if is_inclusion else ('lbl', label_c)
        m_a, m_c = get_mask(key_a), get_mask(key_c)
        n_a, n_c = get_dilated(key_a), get_dilated(key_c)
        viol = ((n_c * m_a + n_a * m_c) >= 1.0).astype(jnp.float32)
        crit = jnp.maximum(crit, viol)

    # masked cross-entropy, summed over the whole (folded) block -> SMEM scalar
    out_ref[0, 0] = jnp.sum(ce * crit)


def _fold_batch(x, y_lab):
    """Fold several images into the lane (W) axis when W < 128."""
    B, C, H, W = x.shape
    if W >= 128:
        bt = 1
    else:
        target = min(B, max(1, 128 // W))
        bt = next(d for d in range(target, 0, -1) if B % d == 0)
    bg, wf = B // bt, bt * W
    if bt == 1:
        return x, y_lab, bg, wf
    x_f = (x.reshape(bg, bt, C, H, W)
            .transpose(0, 2, 3, 1, 4)
            .reshape(bg, C, H, wf))
    y_f = (y_lab.reshape(bg, bt, H, W)
                .transpose(0, 2, 1, 3)
                .reshape(bg, H, wf))
    return x_f, y_f, bg, wf


def _topo_loss_impl(x, y_lab, use_roll):
    B, C, H, W = x.shape
    x_f, y_f, bg, wf = _fold_batch(x, y_lab)

    # Explicit scoped-VMEM budget: double-buffered input blocks + temporaries.
    tile = H * wf * 4
    in_bytes = C * H * wf * x.dtype.itemsize + H * wf * 4
    vmem_limit = int(min(96 * 1024 * 1024,
                         max(8 * 1024 * 1024,
                             2 * in_bytes + 48 * tile + (1 << 20))))

    kernel = functools.partial(_topo_ce_kernel, num_classes=C, width=W,
                               interactions=INTERACTIONS, use_roll=use_roll)
    out = pl.pallas_call(
        kernel,
        out_shape=jax.ShapeDtypeStruct((bg, 1), jnp.float32),
        grid_spec=pltpu.PrefetchScalarGridSpec(
            num_scalar_prefetch=0,
            grid=(bg,),
            in_specs=[
                pl.BlockSpec((1, C, H, wf), lambda g: (g, 0, 0, 0)),
                pl.BlockSpec((1, H, wf), lambda g: (g, 0, 0)),
            ],
            out_specs=pl.BlockSpec((1, 1), lambda g: (g, 0),
                                   memory_space=pltpu.MemorySpace.SMEM),
        ),
        compiler_params=pltpu.CompilerParams(
            dimension_semantics=("parallel",),
            vmem_limit_bytes=vmem_limit),
    )(x_f, y_f)

    # out[g] = masked-CE sum over all images folded into grid step g;
    # the loss is the batch mean of per-image sums.
    return jnp.sum(out) / B


def topo_inter_loss(x, y):
    """x: (B, C, H, W) logits; y: (B, 1, H, W) integer labels in [0, C)."""
    B, C, H, W = x.shape
    y_lab = y.reshape(B, H, W).astype(jnp.int32)
    try:
        return jax.block_until_ready(_topo_loss_impl(x, y_lab, use_roll=True))
    except Exception:
        # TODO(synk): if pltpu.roll fails to lower for this block shape on the
        # current backend, fall back to the proven banded-matmul dilation.
        return _topo_loss_impl(x, y_lab, use_roll=False)


# ------------------------- pure-JAX reference --------------------------------
def _dilate_ref(m):
    p = jnp.pad(m, ((0, 0), (1, 1), (1, 1)))
    conv = (p[:, 1:-1, 1:-1] + p[:, :-2, 1:-1] + p[:, 2:, 1:-1]
            + p[:, 1:-1, :-2] + p[:, 1:-1, 2:])
    return (conv >= 1.0).astype(jnp.float32)


def ref_loss(x, y):
    P = jnp.argmax(jax.nn.softmax(x, axis=1), axis=1)
    crit = jnp.zeros(P.shape, bool)
    for (inc, a, c) in INTERACTIONS:
        ma = (P == a).astype(jnp.float32)
        if inc:
            mc = jnp.logical_not(jnp.logical_or(P == c, P == a)).astype(jnp.float32)
        else:
            mc = (P == c).astype(jnp.float32)
        viol = (_dilate_ref(mc) * ma + _dilate_ref(ma) * mc) >= 1.0
        crit = jnp.logical_or(crit, viol)
    lab = y[:, 0].astype(jnp.int32)
    lse = jax.scipy.special.logsumexp(x, axis=1)
    xy = jnp.take_along_axis(x, lab[:, None], axis=1)[:, 0]
    ce = (lse - xy) * crit.astype(jnp.float32)
    return ce.sum(axis=(1, 2)).mean()


if __name__ == "__main__":
    key = jax.random.PRNGKey(0)
    kx, ky = jax.random.split(key)
    B, C, H, W = 2, 4, 16, 16
    x = jax.random.normal(kx, (B, C, H, W), jnp.float32)
    y = jax.random.randint(ky, (B, 1, H, W), 0, C, jnp.int32)

    loss = topo_inter_loss(x, y)
    jax.block_until_ready(loss)

    ref = ref_loss(x, y)
    np.testing.assert_allclose(np.asarray(loss), np.asarray(ref),
                               rtol=1e-4, atol=1e-4)
    print("KERNEL_OK")
</pallas_src>

<mosaic_0001>
module attributes {stable_mosaic.version = 11 : i64} {
  func.func @_topo_ce_kernel(%arg0: i32, %arg1: memref<1x4x16x32xf32, #tpu.memory_space<vmem>>, %arg2: memref<1x16x32xi32, #tpu.memory_space<vmem>>, %arg3: memref<1x1xf32, #tpu.memory_space<smem>>) attributes {dimension_semantics = [#tpu.dimension_semantics<parallel>], iteration_bounds = array<i64: 1>, scalar_prefetch = 0 : i64, scratch_operands = 0 : i64, tpu.core_type = #tpu.core_type<tc>, window_params = [{transform_indices = @transform_0, window_bounds = array<i64: 1, 4, 16, 32>}, {transform_indices = @transform_1, window_bounds = array<i64: 1, 16, 32>}, {transform_indices = @transform_2, window_bounds = array<i64: 1, 1>}]} {
    %c0 = arith.constant 0 : index
    %c0_0 = arith.constant 0 : index
    %c0_1 = arith.constant 0 : index
    %0 = vector.load %arg2[%c0, %c0_0, %c0_1] : memref<1x16x32xi32, #tpu.memory_space<vmem>>, vector<1x16x32xi32>
    %1 = vector.shape_cast %0 : vector<1x16x32xi32> to vector<16x32xi32>
    %c0_2 = arith.constant 0 : index
    %c0_3 = arith.constant 0 : index
    %c0_4 = arith.constant 0 : index
    %c0_5 = arith.constant 0 : index
    %2 = vector.load %arg1[%c0_2, %c0_3, %c0_4, %c0_5] : memref<1x4x16x32xf32, #tpu.memory_space<vmem>>, vector<1x1x16x32xf32>
    %3 = vector.shape_cast %2 : vector<1x1x16x32xf32> to vector<16x32xf32>
    %c0_i32 = arith.constant 0 : i32
    %4 = vector.broadcast %c0_i32 : i32 to vector<16x32xi32>
    %cst = arith.constant 1.000000e+00 : f32
    %5 = vector.broadcast %cst : f32 to vector<16x32xf32>
    %c0_i32_6 = arith.constant 0 : i32
    %6 = vector.broadcast %c0_i32_6 : i32 to vector<16x32xi32>
    %7 = arith.cmpi eq, %1, %6 : vector<16x32xi32>
    %cst_7 = arith.constant 0.000000e+00 : f32
    %8 = vector.broadcast %cst_7 : f32 to vector<16x32xf32>
    %9 = arith.select %7, %3, %8 : vector<16x32xi1>, vector<16x32xf32>
    %c0_8 = arith.constant 0 : index
    %c1 = arith.constant 1 : index
    %c0_9 = arith.constant 0 : index
    %c0_10 = arith.constant 0 : index
    %10 = vector.load %arg1[%c0_8, %c1, %c0_9, %c0_10] : memref<1x4x16x32xf32, #tpu.memory_space<vmem>>, vector<1x1x16x32xf32>
    %11 = vector.shape_cast %10 : vector<1x1x16x32xf32> to vector<16x32xf32>
    %12 = arith.cmpf ogt, %11, %3 : vector<16x32xf32>
    %13 = arith.select %12, %11, %3 : vector<16x32xi1>, vector<16x32xf32>
    %14 = arith.subf %3, %13 : vector<16x32xf32>
    %15 = math.exp %14 : vector<16x32xf32>
    %16 = arith.mulf %5, %15 : vector<16x32xf32>
    %17 = arith.subf %11, %13 : vector<16x32xf32>
    %18 = math.exp %17 : vector<16x32xf32>
    %19 = arith.addf %16, %18 : vector<16x32xf32>
    %c1_i32 = arith.constant 1 : i32
    %20 = vector.broadcast %c1_i32 : i32 to vector<16x32xi32>
    %21 = arith.select %12, %20, %4 : vector<16x32xi1>, vector<16x32xi32>
    %c1_i32_11 = arith.constant 1 : i32
    %22 = vector.broadcast %c1_i32_11 : i32 to vector<16x32xi32>
    %23 = arith.cmpi eq, %1, %22 : vector<16x32xi32>
    %cst_12 = arith.constant 0.000000e+00 : f32
    %24 = vector.broadcast %cst_12 : f32 to vector<16x32xf32>
    %25 = arith.select %23, %11, %24 : vector<16x32xi1>, vector<16x32xf32>
    %26 = arith.addf %9, %25 : vector<16x32xf32>
    %c0_13 = arith.constant 0 : index
    %c2 = arith.constant 2 : index
    %c0_14 = arith.constant 0 : index
    %c0_15 = arith.constant 0 : index
    %27 = vector.load %arg1[%c0_13, %c2, %c0_14, %c0_15] : memref<1x4x16x32xf32, #tpu.memory_space<vmem>>, vector<1x1x16x32xf32>
    %28 = vector.shape_cast %27 : vector<1x1x16x32xf32> to vector<16x32xf32>
    %29 = arith.cmpf ogt, %28, %13 : vector<16x32xf32>
    %30 = arith.select %29, %28, %13 : vector<16x32xi1>, vector<16x32xf32>
    %31 = arith.subf %13, %30 : vector<16x32xf32>
    %32 = math.exp %31 : vector<16x32xf32>
    %33 = arith.mulf %19, %32 : vector<16x32xf32>
    %34 = arith.subf %28, %30 : vector<16x32xf32>
    %35 = math.exp %34 : vector<16x32xf32>
    %36 = arith.addf %33, %35 : vector<16x32xf32>
    %c2_i32 = arith.constant 2 : i32
    %37 = vector.broadcast %c2_i32 : i32 to vector<16x32xi32>
    %38 = arith.select %29, %37, %21 : vector<16x32xi1>, vector<16x32xi32>
    %c2_i32_16 = arith.constant 2 : i32
    %39 = vector.broadcast %c2_i32_16 : i32 to vector<16x32xi32>
    %40 = arith.cmpi eq, %1, %39 : vector<16x32xi32>
    %cst_17 = arith.constant 0.000000e+00 : f32
    %41 = vector.broadcast %cst_17 : f32 to vector<16x32xf32>
    %42 = arith.select %40, %28, %41 : vector<16x32xi1>, vector<16x32xf32>
    %43 = arith.addf %26, %42 : vector<16x32xf32>
    %c0_18 = arith.constant 0 : index
    %c3 = arith.constant 3 : index
    %c0_19 = arith.constant 0 : index
    %c0_20 = arith.constant 0 : index
    %44 = vector.load %arg1[%c0_18, %c3, %c0_19, %c0_20] : memref<1x4x16x32xf32, #tpu.memory_space<vmem>>, vector<1x1x16x32xf32>
    %45 = vector.shape_cast %44 : vector<1x1x16x32xf32> to vector<16x32xf32>
    %46 = arith.cmpf ogt, %45, %30 : vector<16x32xf32>
    %47 = arith.select %46, %45, %30 : vector<16x32xi1>, vector<16x32xf32>
    %48 = arith.subf %30, %47 : vector<16x32xf32>
    %49 = math.exp %48 : vector<16x32xf32>
    %50 = arith.mulf %36, %49 : vector<16x32xf32>
    %51 = arith.subf %45, %47 : vector<16x32xf32>
    %52 = math.exp %51 : vector<16x32xf32>
    %53 = arith.addf %50, %52 : vector<16x32xf32>
    %c3_i32 = arith.constant 3 : i32
    %54 = vector.broadcast %c3_i32 : i32 to vector<16x32xi32>
    %55 = arith.select %46, %54, %38 : vector<16x32xi1>, vector<16x32xi32>
    %c3_i32_21 = arith.constant 3 : i32
    %56 = vector.broadcast %c3_i32_21 : i32 to vector<16x32xi32>
    %57 = arith.cmpi eq, %1, %56 : vector<16x32xi32>
    %cst_22 = arith.constant 0.000000e+00 : f32
    %58 = vector.broadcast %cst_22 : f32 to vector<16x32xf32>
    %59 = arith.select %57, %45, %58 : vector<16x32xi1>, vector<16x32xf32>
    %60 = arith.addf %43, %59 : vector<16x32xf32>
    %61 = math.log %53 : vector<16x32xf32>
    %62 = arith.addf %47, %61 : vector<16x32xf32>
    %63 = arith.subf %62, %60 : vector<16x32xf32>
    %64 = tpu.iota {dimensions = array<i32: 0>} : vector<16x32xi32>
    %65 = tpu.iota {dimensions = array<i32: 1>} : vector<16x32xi32>
    %true = arith.constant true
    %66 = vector.broadcast %true : i1 to vector<16x32xi1>
    %true_23 = arith.constant true
    %67 = vector.broadcast %true_23 : i1 to vector<16x32xi1>
    %c0_i32_24 = arith.constant 0 : i32
    %68 = vector.broadcast %c0_i32_24 : i32 to vector<16x32xi32>
    %69 = arith.cmpi ne, %65, %68 : vector<16x32xi32>
    %70 = arith.andi %66, %69 : vector<16x32xi1>
    %c15_i32 = arith.constant 15 : i32
    %71 = vector.broadcast %c15_i32 : i32 to vector<16x32xi32>
    %72 = arith.cmpi ne, %65, %71 : vector<16x32xi32>
    %73 = arith.andi %67, %72 : vector<16x32xi1>
    %c16_i32 = arith.constant 16 : i32
    %74 = vector.broadcast %c16_i32 : i32 to vector<16x32xi32>
    %75 = arith.cmpi ne, %65, %74 : vector<16x32xi32>
    %76 = arith.andi %70, %75 : vector<16x32xi1>
    %c31_i32 = arith.constant 31 : i32
    %77 = vector.broadcast %c31_i32 : i32 to vector<16x32xi32>
    %78 = arith.cmpi ne, %65, %77 : vector<16x32xi32>
    %79 = arith.andi %73, %78 : vector<16x32xi1>
    %c1_i32_25 = arith.constant 1 : i32
    %80 = tpu.dynamic_rotate %64 by %c1_i32_25 dim 0 : vector<16x32xi32>, i32 -> vector<16x32xi32>
    %c1_i32_26 = arith.constant 1 : i32
    %81 = vector.broadcast %c1_i32_26 : i32 to vector<16x32xi32>
    %82 = arith.subi %64, %81 : vector<16x32xi32>
    %83 = arith.cmpi eq, %80, %82 : vector<16x32xi32>
    %c1_i32_27 = arith.constant 1 : i32
    %84 = vector.broadcast %c1_i32_27 : i32 to vector<16x32xi32>
    %85 = arith.addi %64, %84 : vector<16x32xi32>
    %86 = arith.cmpi eq, %80, %85 : vector<16x32xi32>
    %87 = arith.ori %83, %86 : vector<16x32xi1>
    %88 = arith.extui %87 : vector<16x32xi1> to vector<16x32xi32>
    %89 = arith.sitofp %88 : vector<16x32xi32> to vector<16x32xf32>
    %c15_i32_28 = arith.constant 15 : i32
    %90 = tpu.dynamic_rotate %64 by %c15_i32_28 dim 0 : vector<16x32xi32>, i32 -> vector<16x32xi32>
    %c1_i32_29 = arith.constant 1 : i32
    %91 = vector.broadcast %c1_i32_29 : i32 to vector<16x32xi32>
    %92 = arith.subi %64, %91 : vector<16x32xi32>
    %93 = arith.cmpi eq, %90, %92 : vector<16x32xi32>
    %c1_i32_30 = arith.constant 1 : i32
    %94 = vector.broadcast %c1_i32_30 : i32 to vector<16x32xi32>
    %95 = arith.addi %64, %94 : vector<16x32xi32>
    %96 = arith.cmpi eq, %90, %95 : vector<16x32xi32>
    %97 = arith.ori %93, %96 : vector<16x32xi1>
    %98 = arith.extui %97 : vector<16x32xi1> to vector<16x32xi32>
    %99 = arith.sitofp %98 : vector<16x32xi32> to vector<16x32xf32>
    %c1_i32_31 = arith.constant 1 : i32
    %100 = tpu.dynamic_rotate %65 by %c1_i32_31 dim 1 : vector<16x32xi32>, i32 -> vector<16x32xi32>
    %c1_i32_32 = arith.constant 1 : i32
    %101 = vector.broadcast %c1_i32_32 : i32 to vector<16x32xi32>
    %102 = arith.subi %65, %101 : vector<16x32xi32>
    %103 = arith.cmpi eq, %100, %102 : vector<16x32xi32>
    %104 = arith.andi %103, %76 : vector<16x32xi1>
    %c1_i32_33 = arith.constant 1 : i32
    %105 = vector.broadcast %c1_i32_33 : i32 to vector<16x32xi32>
    %106 = arith.addi %65, %105 : vector<16x32xi32>
    %107 = arith.cmpi eq, %100, %106 : vector<16x32xi32>
    %108 = arith.andi %107, %79 : vector<16x32xi1>
    %109 = arith.ori %104, %108 : vector<16x32xi1>
    %110 = arith.extui %109 : vector<16x32xi1> to vector<16x32xi32>
    %111 = arith.sitofp %110 : vector<16x32xi32> to vector<16x32xf32>
    %c31_i32_34 = arith.constant 31 : i32
    %112 = tpu.dynamic_rotate %65 by %c31_i32_34 dim 1 : vector<16x32xi32>, i32 -> vector<16x32xi32>
    %c1_i32_35 = arith.constant 1 : i32
    %113 = vector.broadcast %c1_i32_35 : i32 to vector<16x32xi32>
    %114 = arith.subi %65, %113 : vector<16x32xi32>
    %115 = arith.cmpi eq, %112, %114 : vector<16x32xi32>
    %116 = arith.andi %115, %76 : vector<16x32xi1>
    %c1_i32_36 = arith.constant 1 : i32
    %117 = vector.broadcast %c1_i32_36 : i32 to vector<16x32xi32>
    %118 = arith.addi %65, %117 : vector<16x32xi32>
    %119 = arith.cmpi eq, %112, %118 : vector<16x32xi32>
    %120 = arith.andi %119, %79 : vector<16x32xi1>
    %121 = arith.ori %116, %120 : vector<16x32xi1>
    %122 = arith.extui %121 : vector<16x32xi1> to vector<16x32xi32>
    %123 = arith.sitofp %122 : vector<16x32xi32> to vector<16x32xf32>
    %cst_37 = arith.constant 0.000000e+00 : f32
    %124 = vector.broadcast %cst_37 : f32 to vector<16x32xf32>
    %c1_i32_38 = arith.constant 1 : i32
    %125 = vector.broadcast %c1_i32_38 : i32 to vector<16x32xi32>
    %126 = arith.cmpi eq, %55, %125 : vector<16x32xi32>
    %127 = arith.extui %126 : vector<16x32xi1> to vector<16x32xi32>
    %128 = arith.sitofp %127 : vector<16x32xi32> to vector<16x32xf32>
    %c2_i32_39 = arith.constant 2 : i32
    %129 = vector.broadcast %c2_i32_39 : i32 to vector<16x32xi32>
    %130 = arith.cmpi eq, %55, %129 : vector<16x32xi32>
    %c1_i32_40 = arith.constant 1 : i32
    %131 = vector.broadcast %c1_i32_40 : i32 to vector<16x32xi32>
    %132 = arith.cmpi eq, %55, %131 : vector<16x32xi32>
    %133 = arith.ori %130, %132 : vector<16x32xi1>
    %cst_41 = arith.constant dense<true> : vector<16x32xi1>
    %134 = arith.xori %133, %cst_41 : vector<16x32xi1>
    %135 = arith.extui %134 : vector<16x32xi1> to vector<16x32xi32>
    %136 = arith.sitofp %135 : vector<16x32xi32> to vector<16x32xf32>
    %c1_i32_42 = arith.constant 1 : i32
    %137 = tpu.dynamic_rotate %128 by %c1_i32_42 dim 0 : vector<16x32xf32>, i32 -> vector<16x32xf32>
    %138 = arith.mulf %137, %89 : vector<16x32xf32>
    %c15_i32_43 = arith.constant 15 : i32
    %139 = tpu.dynamic_rotate %128 by %c15_i32_43 dim 0 : vector<16x32xf32>, i32 -> vector<16x32xf32>
    %140 = arith.mulf %139, %99 : vector<16x32xf32>
    %141 = arith.maximumf %138, %140 : vector<16x32xf32>
    %c1_i32_44 = arith.constant 1 : i32
    %142 = tpu.dynamic_rotate %128 by %c1_i32_44 dim 1 : vector<16x32xf32>, i32 -> vector<16x32xf32>
    %143 = arith.mulf %142, %111 : vector<16x32xf32>
    %144 = arith.maximumf %141, %143 : vector<16x32xf32>
    %c31_i32_45 = arith.constant 31 : i32
    %145 = tpu.dynamic_rotate %128 by %c31_i32_45 dim 1 : vector<16x32xf32>, i32 -> vector<16x32xf32>
    %146 = arith.mulf %145, %123 : vector<16x32xf32>
    %147 = arith.maximumf %144, %146 : vector<16x32xf32>
    %148 = arith.maximumf %128, %147 : vector<16x32xf32>
    %c1_i32_46 = arith.constant 1 : i32
    %149 = tpu.dynamic_rotate %136 by %c1_i32_46 dim 0 : vector<16x32xf32>, i32 -> vector<16x32xf32>
    %150 = arith.mulf %149, %89 : vector<16x32xf32>
    %c15_i32_47 = arith.constant 15 : i32
    %151 = tpu.dynamic_rotate %136 by %c15_i32_47 dim 0 : vector<16x32xf32>, i32 -> vector<16x32xf32>
    %152 = arith.mulf %151, %99 : vector<16x32xf32>
    %153 = arith.maximumf %150, %152 : vector<16x32xf32>
    %c1_i32_48 = arith.constant 1 : i32
    %154 = tpu.dynamic_rotate %136 by %c1_i32_48 dim 1 : vector<16x32xf32>, i32 -> vector<16x32xf32>
    %155 = arith.mulf %154, %111 : vector<16x32xf32>
    %156 = arith.maximumf %153, %155 : vector<16x32xf32>
    %c31_i32_49 = arith.constant 31 : i32
    %157 = tpu.dynamic_rotate %136 by %c31_i32_49 dim 1 : vector<16x32xf32>, i32 -> vector<16x32xf32>
    %158 = arith.mulf %157, %123 : vector<16x32xf32>
    %159 = arith.maximumf %156, %158 : vector<16x32xf32>
    %160 = arith.maximumf %136, %159 : vector<16x32xf32>
    %161 = arith.mulf %160, %128 : vector<16x32xf32>
    %162 = arith.mulf %148, %136 : vector<16x32xf32>
    %163 = arith.addf %161, %162 : vector<16x32xf32>
    %cst_50 = arith.constant 1.000000e+00 : f32
    %164 = vector.broadcast %cst_50 : f32 to vector<16x32xf32>
    %165 = arith.cmpf oge, %163, %164 : vector<16x32xf32>
    %166 = arith.extui %165 : vector<16x32xi1> to vector<16x32xi32>
    %167 = arith.sitofp %166 : vector<16x32xi32> to vector<16x32xf32>
    %168 = arith.maximumf %124, %167 : vector<16x32xf32>
    %c3_i32_51 = arith.constant 3 : i32
    %169 = vector.broadcast %c3_i32_51 : i32 to vector<16x32xi32>
    %170 = arith.cmpi eq, %55, %169 : vector<16x32xi32>
    %171 = arith.extui %170 : vector<16x32xi1> to vector<16x32xi32>
    %172 = arith.sitofp %171 : vector<16x32xi32> to vector<16x32xf32>
    %c1_i32_52 = arith.constant 1 : i32
    %173 = tpu.dynamic_rotate %172 by %c1_i32_52 dim 0 : vector<16x32xf32>, i32 -> vector<16x32xf32>
    %174 = arith.mulf %173, %89 : vector<16x32xf32>
    %c15_i32_53 = arith.constant 15 : i32
    %175 = tpu.dynamic_rotate %172 by %c15_i32_53 dim 0 : vector<16x32xf32>, i32 -> vector<16x32xf32>
    %176 = arith.mulf %175, %99 : vector<16x32xf32>
    %177 = arith.maximumf %174, %176 : vector<16x32xf32>
    %c1_i32_54 = arith.constant 1 : i32
    %178 = tpu.dynamic_rotate %172 by %c1_i32_54 dim 1 : vector<16x32xf32>, i32 -> vector<16x32xf32>
    %179 = arith.mulf %178, %111 : vector<16x32xf32>
    %180 = arith.maximumf %177, %179 : vector<16x32xf32>
    %c31_i32_55 = arith.constant 31 : i32
    %181 = tpu.dynamic_rotate %172 by %c31_i32_55 dim 1 : vector<16x32xf32>, i32 -> vector<16x32xf32>
    %182 = arith.mulf %181, %123 : vector<16x32xf32>
    %183 = arith.maximumf %180, %182 : vector<16x32xf32>
    %184 = arith.maximumf %172, %183 : vector<16x32xf32>
    %185 = arith.mulf %184, %128 : vector<16x32xf32>
    %186 = arith.mulf %148, %172 : vector<16x32xf32>
    %187 = arith.addf %185, %186 : vector<16x32xf32>
    %cst_56 = arith.constant 1.000000e+00 : f32
    %188 = vector.broadcast %cst_56 : f32 to vector<16x32xf32>
    %189 = arith.cmpf oge, %187, %188 : vector<16x32xf32>
    %190 = arith.extui %189 : vector<16x32xi1> to vector<16x32xi32>
    %191 = arith.sitofp %190 : vector<16x32xi32> to vector<16x32xf32>
    %192 = arith.maximumf %168, %191 : vector<16x32xf32>
    %193 = arith.mulf %63, %192 : vector<16x32xf32>
    %194 = vector.shape_cast %193 : vector<16x32xf32> to vector<1x16x32xf32>
    %cst_57 = arith.constant dense<0.000000e+00> : vector<1xf32>
    %195 = vector.multi_reduction <add>, %194, %cst_57 [1, 2] : vector<1x16x32xf32> to vector<1xf32>
    %196 = vector.shape_cast %195 : vector<1xf32> to vector<1x1x1xf32>
    %197 = vector.extract %196[0, 0, 0] : f32 from vector<1x1x1xf32>
    %c0_58 = arith.constant 0 : index
    %c0_59 = arith.constant 0 : index
    %198 = memref.load %arg3[%c0_58, %c0_59] : memref<1x1xf32, #tpu.memory_space<smem>>
    memref.store %197, %arg3[%c0_58, %c0_59] : memref<1x1xf32, #tpu.memory_space<smem>>
    return
  }
  func.func @transform_0(%arg0: i32) -> (i32, i32, i32, i32) {
    %c0_i32 = arith.constant 0 : i32
    %c0_i32_0 = arith.constant 0 : i32
    %c0_i32_1 = arith.constant 0 : i32
    %c0_i32_2 = arith.constant 0 : i32
    return %arg0, %c0_i32, %c0_i32_0, %c0_i32_1 : i32, i32, i32, i32
  }
  func.func @transform_1(%arg0: i32) -> (i32, i32, i32) {
    %c0_i32 = arith.constant 0 : i32
    %c0_i32_0 = arith.constant 0 : i32
    %c0_i32_1 = arith.constant 0 : i32
    return %arg0, %c0_i32, %c0_i32_0 : i32, i32, i32
  }
  func.func @transform_2(%arg0: i32) -> (i32, i32) {
    %c0_i32 = arith.constant 0 : i32
    %c0_i32_0 = arith.constant 0 : i32
    return %arg0, %c0_i32 : i32, i32
  }
}

module attributes {stable_mosaic.version = 11 : i64} {
  func.func @_topo_ce_kernel(%arg0: i32, %arg1: memref<1x4x16x32xf32, #tpu.memory_space<vmem>>, %arg2: memref<1x16x32xi32, #tpu.memory_space<vmem>>, %arg3: memref<1x1xf32, #tpu.memory_space<smem>>) attributes {dimension_semantics = [#tpu.dimension_semantics<parallel>], iteration_bounds = array<i64: 1>, scalar_prefetch = 0 : i64, scratch_operands = 0 : i64, tpu.core_type = #tpu.core_type<tc>, window_params = [{transform_indices = @transform_0, window_bounds = array<i64: 1, 4, 16, 32>}, {transform_indices = @transform_1, window_bounds = array<i64: 1, 16, 32>}, {transform_indices = @transform_2, window_bounds = array<i64: 1, 1>}]} {
    %c0 = arith.constant 0 : index
    %c0_0 = arith.constant 0 : index
    %c0_1 = arith.constant 0 : index
    %0 = vector.load %arg2[%c0, %c0_0, %c0_1] : memref<1x16x32xi32, #tpu.memory_space<vmem>>, vector<1x16x32xi32>
    %1 = vector.shape_cast %0 : vector<1x16x32xi32> to vector<16x32xi32>
    %c0_2 = arith.constant 0 : index
    %c0_3 = arith.constant 0 : index
    %c0_4 = arith.constant 0 : index
    %c0_5 = arith.constant 0 : index
    %2 = vector.load %arg1[%c0_2, %c0_3, %c0_4, %c0_5] : memref<1x4x16x32xf32, #tpu.memory_space<vmem>>, vector<1x1x16x32xf32>
    %3 = vector.shape_cast %2 : vector<1x1x16x32xf32> to vector<16x32xf32>
    %c0_i32 = arith.constant 0 : i32
    %4 = vector.broadcast %c0_i32 : i32 to vector<16x32xi32>
    %cst = arith.constant 1.000000e+00 : f32
    %5 = vector.broadcast %cst : f32 to vector<16x32xf32>
    %c0_i32_6 = arith.constant 0 : i32
    %6 = vector.broadcast %c0_i32_6 : i32 to vector<16x32xi32>
    %7 = arith.cmpi eq, %1, %6 : vector<16x32xi32>
    %cst_7 = arith.constant 0.000000e+00 : f32
    %8 = vector.broadcast %cst_7 : f32 to vector<16x32xf32>
    %9 = arith.select %7, %3, %8 : vector<16x32xi1>, vector<16x32xf32>
    %c0_8 = arith.constant 0 : index
    %c1 = arith.constant 1 : index
    %c0_9 = arith.constant 0 : index
    %c0_10 = arith.constant 0 : index
    %10 = vector.load %arg1[%c0_8, %c1, %c0_9, %c0_10] : memref<1x4x16x32xf32, #tpu.memory_space<vmem>>, vector<1x1x16x32xf32>
    %11 = vector.shape_cast %10 : vector<1x1x16x32xf32> to vector<16x32xf32>
    %12 = arith.cmpf ogt, %11, %3 : vector<16x32xf32>
    %13 = arith.select %12, %11, %3 : vector<16x32xi1>, vector<16x32xf32>
    %14 = arith.subf %3, %13 : vector<16x32xf32>
    %15 = math.exp %14 : vector<16x32xf32>
    %16 = arith.mulf %5, %15 : vector<16x32xf32>
    %17 = arith.subf %11, %13 : vector<16x32xf32>
    %18 = math.exp %17 : vector<16x32xf32>
    %19 = arith.addf %16, %18 : vector<16x32xf32>
    %c1_i32 = arith.constant 1 : i32
    %20 = vector.broadcast %c1_i32 : i32 to vector<16x32xi32>
    %21 = arith.select %12, %20, %4 : vector<16x32xi1>, vector<16x32xi32>
    %c1_i32_11 = arith.constant 1 : i32
    %22 = vector.broadcast %c1_i32_11 : i32 to vector<16x32xi32>
    %23 = arith.cmpi eq, %1, %22 : vector<16x32xi32>
    %cst_12 = arith.constant 0.000000e+00 : f32
    %24 = vector.broadcast %cst_12 : f32 to vector<16x32xf32>
    %25 = arith.select %23, %11, %24 : vector<16x32xi1>, vector<16x32xf32>
    %26 = arith.addf %9, %25 : vector<16x32xf32>
    %c0_13 = arith.constant 0 : index
    %c2 = arith.constant 2 : index
    %c0_14 = arith.constant 0 : index
    %c0_15 = arith.constant 0 : index
    %27 = vector.load %arg1[%c0_13, %c2, %c0_14, %c0_15] : memref<1x4x16x32xf32, #tpu.memory_space<vmem>>, vector<1x1x16x32xf32>
    %28 = vector.shape_cast %27 : vector<1x1x16x32xf32> to vector<16x32xf32>
    %29 = arith.cmpf ogt, %28, %13 : vector<16x32xf32>
    %30 = arith.select %29, %28, %13 : vector<16x32xi1>, vector<16x32xf32>
    %31 = arith.subf %13, %30 : vector<16x32xf32>
    %32 = math.exp %31 : vector<16x32xf32>
    %33 = arith.mulf %19, %32 : vector<16x32xf32>
    %34 = arith.subf %28, %30 : vector<16x32xf32>
    %35 = math.exp %34 : vector<16x32xf32>
    %36 = arith.addf %33, %35 : vector<16x32xf32>
    %c2_i32 = arith.constant 2 : i32
    %37 = vector.broadcast %c2_i32 : i32 to vector<16x32xi32>
    %38 = arith.select %29, %37, %21 : vector<16x32xi1>, vector<16x32xi32>
    %c2_i32_16 = arith.constant 2 : i32
    %39 = vector.broadcast %c2_i32_16 : i32 to vector<16x32xi32>
    %40 = arith.cmpi eq, %1, %39 : vector<16x32xi32>
    %cst_17 = arith.constant 0.000000e+00 : f32
    %41 = vector.broadcast %cst_17 : f32 to vector<16x32xf32>
    %42 = arith.select %40, %28, %41 : vector<16x32xi1>, vector<16x32xf32>
    %43 = arith.addf %26, %42 : vector<16x32xf32>
    %c0_18 = arith.constant 0 : index
    %c3 = arith.constant 3 : index
    %c0_19 = arith.constant 0 : index
    %c0_20 = arith.constant 0 : index
    %44 = vector.load %arg1[%c0_18, %c3, %c0_19, %c0_20] : memref<1x4x16x32xf32, #tpu.memory_space<vmem>>, vector<1x1x16x32xf32>
    %45 = vector.shape_cast %44 : vector<1x1x16x32xf32> to vector<16x32xf32>
    %46 = arith.cmpf ogt, %45, %30 : vector<16x32xf32>
    %47 = arith.select %46, %45, %30 : vector<16x32xi1>, vector<16x32xf32>
    %48 = arith.subf %30, %47 : vector<16x32xf32>
    %49 = math.exp %48 : vector<16x32xf32>
    %50 = arith.mulf %36, %49 : vector<16x32xf32>
    %51 = arith.subf %45, %47 : vector<16x32xf32>
    %52 = math.exp %51 : vector<16x32xf32>
    %53 = arith.addf %50, %52 : vector<16x32xf32>
    %c3_i32 = arith.constant 3 : i32
    %54 = vector.broadcast %c3_i32 : i32 to vector<16x32xi32>
    %55 = arith.select %46, %54, %38 : vector<16x32xi1>, vector<16x32xi32>
    %c3_i32_21 = arith.constant 3 : i32
    %56 = vector.broadcast %c3_i32_21 : i32 to vector<16x32xi32>
    %57 = arith.cmpi eq, %1, %56 : vector<16x32xi32>
    %cst_22 = arith.constant 0.000000e+00 : f32
    %58 = vector.broadcast %cst_22 : f32 to vector<16x32xf32>
    %59 = arith.select %57, %45, %58 : vector<16x32xi1>, vector<16x32xf32>
    %60 = arith.addf %43, %59 : vector<16x32xf32>
    %61 = math.log %53 : vector<16x32xf32>
    %62 = arith.addf %47, %61 : vector<16x32xf32>
    %63 = arith.subf %62, %60 : vector<16x32xf32>
    %64 = tpu.iota {dimensions = array<i32: 0>} : vector<16x16xi32>
    %65 = tpu.iota {dimensions = array<i32: 1>} : vector<16x16xi32>
    %66 = arith.subi %64, %65 : vector<16x16xi32>
    %67 = math.absi %66 : vector<16x16xi32>
    %c1_i32_23 = arith.constant 1 : i32
    %68 = vector.broadcast %c1_i32_23 : i32 to vector<16x16xi32>
    %69 = arith.cmpi sle, %67, %68 : vector<16x16xi32>
    %70 = arith.extui %69 : vector<16x16xi1> to vector<16x16xi32>
    %71 = arith.sitofp %70 : vector<16x16xi32> to vector<16x16xf32>
    %72 = arith.truncf %71 : vector<16x16xf32> to vector<16x16xbf16>
    %73 = tpu.iota {dimensions = array<i32: 0>} : vector<32x32xi32>
    %74 = tpu.iota {dimensions = array<i32: 1>} : vector<32x32xi32>
    %75 = arith.subi %73, %74 : vector<32x32xi32>
    %76 = math.absi %75 : vector<32x32xi32>
    %c1_i32_24 = arith.constant 1 : i32
    %77 = vector.broadcast %c1_i32_24 : i32 to vector<32x32xi32>
    %78 = arith.cmpi sle, %76, %77 : vector<32x32xi32>
    %c15_i32 = arith.constant 15 : i32
    %79 = vector.broadcast %c15_i32 : i32 to vector<32x32xi32>
    %80 = arith.cmpi eq, %73, %79 : vector<32x32xi32>
    %c16_i32 = arith.constant 16 : i32
    %81 = vector.broadcast %c16_i32 : i32 to vector<32x32xi32>
    %82 = arith.cmpi eq, %74, %81 : vector<32x32xi32>
    %83 = arith.andi %80, %82 : vector<32x32xi1>
    %cst_25 = arith.constant dense<true> : vector<32x32xi1>
    %84 = arith.xori %83, %cst_25 : vector<32x32xi1>
    %85 = arith.andi %78, %84 : vector<32x32xi1>
    %c16_i32_26 = arith.constant 16 : i32
    %86 = vector.broadcast %c16_i32_26 : i32 to vector<32x32xi32>
    %87 = arith.cmpi eq, %73, %86 : vector<32x32xi32>
    %c15_i32_27 = arith.constant 15 : i32
    %88 = vector.broadcast %c15_i32_27 : i32 to vector<32x32xi32>
    %89 = arith.cmpi eq, %74, %88 : vector<32x32xi32>
    %90 = arith.andi %87, %89 : vector<32x32xi1>
    %cst_28 = arith.constant dense<true> : vector<32x32xi1>
    %91 = arith.xori %90, %cst_28 : vector<32x32xi1>
    %92 = arith.andi %85, %91 : vector<32x32xi1>
    %93 = arith.extui %92 : vector<32x32xi1> to vector<32x32xi32>
    %94 = arith.sitofp %93 : vector<32x32xi32> to vector<32x32xf32>
    %95 = arith.truncf %94 : vector<32x32xf32> to vector<32x32xbf16>
    %cst_29 = arith.constant 0.000000e+00 : f32
    %96 = vector.broadcast %cst_29 : f32 to vector<16x32xf32>
    %c1_i32_30 = arith.constant 1 : i32
    %97 = vector.broadcast %c1_i32_30 : i32 to vector<16x32xi32>
    %98 = arith.cmpi eq, %55, %97 : vector<16x32xi32>
    %99 = arith.extui %98 : vector<16x32xi1> to vector<16x32xi32>
    %100 = arith.sitofp %99 : vector<16x32xi32> to vector<16x32xf32>
    %c2_i32_31 = arith.constant 2 : i32
    %101 = vector.broadcast %c2_i32_31 : i32 to vector<16x32xi32>
    %102 = arith.cmpi eq, %55, %101 : vector<16x32xi32>
    %c1_i32_32 = arith.constant 1 : i32
    %103 = vector.broadcast %c1_i32_32 : i32 to vector<16x32xi32>
    %104 = arith.cmpi eq, %55, %103 : vector<16x32xi32>
    %105 = arith.ori %102, %104 : vector<16x32xi1>
    %cst_33 = arith.constant dense<true> : vector<16x32xi1>
    %106 = arith.xori %105, %cst_33 : vector<16x32xi1>
    %107 = arith.extui %106 : vector<16x32xi1> to vector<16x32xi32>
    %108 = arith.sitofp %107 : vector<16x32xi32> to vector<16x32xf32>
    %109 = arith.truncf %100 : vector<16x32xf32> to vector<16x32xbf16>
    %cst_34 = arith.constant dense<0.000000e+00> : vector<16x32xf32>
    %110 = tpu.matmul %72, %109, %cst_34 {dimension_numbers = #tpu.dot_dimension_numbers<[1], [0], [0], [1], [0, 0, 1, 1], [], []>} : vector<16x16xbf16>, vector<16x32xbf16>, vector<16x32xf32> -> vector<16x32xf32>
    %cst_35 = arith.constant dense<0.000000e+00> : vector<16x32xf32>
    %111 = tpu.matmul %109, %95, %cst_35 {dimension_numbers = #tpu.dot_dimension_numbers<[1], [0], [0], [1], [0, 0, 1, 1], [], []>} : vector<16x32xbf16>, vector<32x32xbf16>, vector<16x32xf32> -> vector<16x32xf32>
    %112 = arith.addf %110, %111 : vector<16x32xf32>
    %113 = arith.subf %112, %100 : vector<16x32xf32>
    %cst_36 = arith.constant 1.000000e+00 : f32
    %114 = vector.broadcast %cst_36 : f32 to vector<16x32xf32>
    %115 = arith.cmpf oge, %113, %114 : vector<16x32xf32>
    %116 = arith.extui %115 : vector<16x32xi1> to vector<16x32xi32>
    %117 = arith.sitofp %116 : vector<16x32xi32> to vector<16x32xf32>
    %118 = arith.truncf %108 : vector<16x32xf32> to vector<16x32xbf16>
    %cst_37 = arith.constant dense<0.000000e+00> : vector<16x32xf32>
    %119 = tpu.matmul %72, %118, %cst_37 {dimension_numbers = #tpu.dot_dimension_numbers<[1], [0], [0], [1], [0, 0, 1, 1], [], []>} : vector<16x16xbf16>, vector<16x32xbf16>, vector<16x32xf32> -> vector<16x32xf32>
    %cst_38 = arith.constant dense<0.000000e+00> : vector<16x32xf32>
    %120 = tpu.matmul %118, %95, %cst_38 {dimension_numbers = #tpu.dot_dimension_numbers<[1], [0], [0], [1], [0, 0, 1, 1], [], []>} : vector<16x32xbf16>, vector<32x32xbf16>, vector<16x32xf32> -> vector<16x32xf32>
    %121 = arith.addf %119, %120 : vector<16x32xf32>
    %122 = arith.subf %121, %108 : vector<16x32xf32>
    %cst_39 = arith.constant 1.000000e+00 : f32
    %123 = vector.broadcast %cst_39 : f32 to vector<16x32xf32>
    %124 = arith.cmpf oge, %122, %123 : vector<16x32xf32>
    %125 = arith.extui %124 : vector<16x32xi1> to vector<16x32xi32>
    %126 = arith.sitofp %125 : vector<16x32xi32> to vector<16x32xf32>
    %127 = arith.mulf %126, %100 : vector<16x32xf32>
    %128 = arith.mulf %117, %108 : vector<16x32xf32>
    %129 = arith.addf %127, %128 : vector<16x32xf32>
    %cst_40 = arith.constant 1.000000e+00 : f32
    %130 = vector.broadcast %cst_40 : f32 to vector<16x32xf32>
    %131 = arith.cmpf oge, %129, %130 : vector<16x32xf32>
    %132 = arith.extui %131 : vector<16x32xi1> to vector<16x32xi32>
    %133 = arith.sitofp %132 : vector<16x32xi32> to vector<16x32xf32>
    %134 = arith.maximumf %96, %133 : vector<16x32xf32>
    %c3_i32_41 = arith.constant 3 : i32
    %135 = vector.broadcast %c3_i32_41 : i32 to vector<16x32xi32>
    %136 = arith.cmpi eq, %55, %135 : vector<16x32xi32>
    %137 = arith.extui %136 : vector<16x32xi1> to vector<16x32xi32>
    %138 = arith.sitofp %137 : vector<16x32xi32> to vector<16x32xf32>
    %139 = arith.truncf %138 : vector<16x32xf32> to vector<16x32xbf16>
    %cst_42 = arith.constant dense<0.000000e+00> : vector<16x32xf32>
    %140 = tpu.matmul %72, %139, %cst_42 {dimension_numbers = #tpu.dot_dimension_numbers<[1], [0], [0], [1], [0, 0, 1, 1], [], []>} : vector<16x16xbf16>, vector<16x32xbf16>, vector<16x32xf32> -> vector<16x32xf32>
    %cst_43 = arith.constant dense<0.000000e+00> : vector<16x32xf32>
    %141 = tpu.matmul %139, %95, %cst_43 {dimension_numbers = #tpu.dot_dimension_numbers<[1], [0], [0], [1], [0, 0, 1, 1], [], []>} : vector<16x32xbf16>, vector<32x32xbf16>, vector<16x32xf32> -> vector<16x32xf32>
    %142 = arith.addf %140, %141 : vector<16x32xf32>
    %143 = arith.subf %142, %138 : vector<16x32xf32>
    %cst_44 = arith.constant 1.000000e+00 : f32
    %144 = vector.broadcast %cst_44 : f32 to vector<16x32xf32>
    %145 = arith.cmpf oge, %143, %144 : vector<16x32xf32>
    %146 = arith.extui %145 : vector<16x32xi1> to vector<16x32xi32>
    %147 = arith.sitofp %146 : vector<16x32xi32> to vector<16x32xf32>
    %148 = arith.mulf %147, %100 : vector<16x32xf32>
    %149 = arith.mulf %117, %138 : vector<16x32xf32>
    %150 = arith.addf %148, %149 : vector<16x32xf32>
    %cst_45 = arith.constant 1.000000e+00 : f32
    %151 = vector.broadcast %cst_45 : f32 to vector<16x32xf32>
    %152 = arith.cmpf oge, %150, %151 : vector<16x32xf32>
    %153 = arith.extui %152 : vector<16x32xi1> to vector<16x32xi32>
    %154 = arith.sitofp %153 : vector<16x32xi32> to vector<16x32xf32>
    %155 = arith.maximumf %134, %154 : vector<16x32xf32>
    %156 = arith.mulf %63, %155 : vector<16x32xf32>
    %157 = vector.shape_cast %156 : vector<16x32xf32> to vector<1x16x32xf32>
    %cst_46 = arith.constant dense<0.000000e+00> : vector<1xf32>
    %158 = vector.multi_reduction <add>, %157, %cst_46 [1, 2] : vector<1x16x32xf32> to vector<1xf32>
    %159 = vector.shape_cast %158 : vector<1xf32> to vector<1x1x1xf32>
    %160 = vector.extract %159[0, 0, 0] : f32 from vector<1x1x1xf32>
    %c0_47 = arith.constant 0 : index
    %c0_48 = arith.constant 0 : index
    %161 = memref.load %arg3[%c0_47, %c0_48] : memref<1x1xf32, #tpu.memory_space<smem>>
    memref.store %160, %arg3[%c0_47, %c0_48] : memref<1x1xf32, #tpu.memory_space<smem>>
    return
  }
  func.func @transform_0(%arg0: i32) -> (i32, i32, i32, i32) {
    %c0_i32 = arith.constant 0 : i32
    %c0_i32_0 = arith.constant 0 : i32
    %c0_i32_1 = arith.constant 0 : i32
    %c0_i32_2 = arith.constant 0 : i32
    return %arg0, %c0_i32, %c0_i32_0, %c0_i32_1 : i32, i32, i32, i32
  }
  func.func @transform_1(%arg0: i32) -> (i32, i32, i32) {
    %c0_i32 = arith.constant 0 : i32
    %c0_i32_0 = arith.constant 0 : i32
    %c0_i32_1 = arith.constant 0 : i32
    return %arg0, %c0_i32, %c0_i32_0 : i32, i32, i32
  }
  func.func @transform_2(%arg0: i32) -> (i32, i32) {
    %c0_i32 = arith.constant 0 : i32
    %c0_i32_0 = arith.constant 0 : i32
    return %arg0, %c0_i32 : i32, i32
  }
}

</mosaic_0001>

<bundles_post_ra>
// kernel: tpu_custom_call.1
= control target key start
LH: loop header
LB: loop body
LE: loop exit
PB: predicated region body
PF: predicated region fallthrough
CT: control target
= control target key end

     0   :  { %7 = vsyncpa [#allocation3], 0  ;;  %s950_s0 = inlined_call_operand.hbm [shape: f32[1,4,16,32], index: 0, kind: input, shape index: {}]   ;;  %s951_s1 = inlined_call_operand.hbm [shape: s32[1,16,32], index: 1, kind: input, shape index: {}]   ;;  %s952_s2 = inlined_call_operand.hbm [shape: f32[1,1], index: 2, kind: output, shape index: {}]  }
   0x1   :  { %8 = vsyncpa [#allocation6], 0 }
   0x2   :  { %9 = vsyncpa [#allocation4], 0  ;;  %s627_s9 = smov [#allocation2]   ;;  %s567_s13 = scalar_lea.hbm %s950_s0, 1024 }
   0x3   :  { %s15_s10 = sshll.u32 %s627_s9, 4  ;;  %p568_p0 = scmp.ne.s32.totalorder %s950_s0, %s567_s13  ;;  %s16_s10 = int_to_ptr.vmem [resolvable:$true] %s15_s10 }
   0x4   :  { %p571_p1 = scmp.lt.u32.totalorder %s567_s13, %s950_s0 }
   0x6   :  { %p573_p2 = pnand %p571_p1, %p568_p0 }
   0x8   :  { %576 = shalt.err (!%p573_p2)
}
   0x9   :  { %s577_s18 = scalar_lea.vmem %s16_s10, 1024  ;;  %p582_p4 = scmp.lt.s32.totalorder %s16_s10, %s16_s10 }
   0xa   :  { %p578_p3 = scmp.ne.s32.totalorder %s16_s10, %s577_s18  ;;  %p583_p5 = scmp.lt.s32.totalorder %s577_s18, %s577_s18 }
   0xc   :  { %p584_p6 = por %p583_p5, %p582_p4 }
   0xe   :  { %p585_p7 = pnand %p584_p6, %p578_p3 }
  0x10   :  { %588 = shalt.err (!%p585_p7)
}
  0x11   :  { %s628_s19 = smov 128   ;;  %s629_s20 = smov 8  }
  0x12   :  { %21 = dma.hbm_to_vmem [thread:$0]  %s950_s0, 1024, %s16_s10, [#allocation3], %s628_s19, %s628_s19, %s629_s20  }
  0x13   :  { %s630_s23 = smov [#allocation5]   ;;  %s589_s27 = scalar_lea.hbm %s951_s1, 256 }
  0x14   :  { %s27_s24 = sshll.u32 %s630_s23, 4  ;;  %p590_p8 = scmp.ne.s32.totalorder %s951_s1, %s589_s27  ;;  %s28_s24 = int_to_ptr.vmem [resolvable:$true] %s27_s24 }
  0x15   :  { %p593_p9 = scmp.lt.u32.totalorder %s589_s27, %s951_s1 }
  0x17   :  { %p595_p10 = pnand %p593_p9, %p590_p8 }
  0x19   :  { %598 = shalt.err (!%p595_p10)
}
  0x1a   :  { %s599_s4 = scalar_lea.vmem %s28_s24, 256  ;;  %p604_p12 = scmp.lt.s32.totalorder %s28_s24, %s28_s24 }
  0x1b   :  { %p600_p11 = scmp.ne.s32.totalorder %s28_s24, %s599_s4  ;;  %p605_p13 = scmp.lt.s32.totalorder %s599_s4, %s599_s4 }
  0x1d   :  { %p606_p0 = por %p605_p13, %p604_p12 }
  0x1f   :  { %p607_p1 = pnand %p606_p0, %p600_p11 }
  0x21   :  { %610 = shalt.err (!%p607_p1)
}
  0x22   :  { %33 = dma.hbm_to_vmem [thread:$0]  %s951_s1, 256, %s28_s24, [#allocation6], %s628_s19, %s628_s19, %s629_s20  }
  0x23   :  { %621 = dma.done.wait [#allocation3], 1024  }
  0x24   :  { %622 = vsyncadd [#allocation3], 4294966272 }
  0x25   :  { %623 = dma.done.wait [#allocation6], 256  }
  0x26   :  { %624 = vsyncadd [#allocation6], 4294967040  ;;  %v147_v0 = vlaneseq  ;;  %s631_s6 = smov 32   ;;  %v684_v2 = vld [vmem:[#allocation2] sm:$0xff]  ;;  %v686_v3 = vld [vmem:[#allocation2 + $0x8] sm:$0xff]  ;;  %v632_v9 = vmov 0  }
  0x27   :  { %v688_v4 = vld [vmem:[#allocation2 + $0x10] sm:$0xff]  ;;  %v690_v5 = vld [vmem:[#allocation2 + $0x18] sm:$0xff]  ;;  %v694_v6 = vld [vmem:[#allocation2 + $0x20] sm:$0xff]  ;;  %v633_v22 = vmov 0.0   ;;  %s635_s1 = smov 31   ;;  %s636_s7 = smov 1  }
  0x28   :  { %v680_v1 = vand.u32 127, %v147_v0  ;;  %vm51_vm0 = vcmp.gt.f32.partialorder %v688_v4, %v684_v2  ;;  %v696_v7 = vld [vmem:[#allocation2 + $0x28] sm:$0xff]  ;;  %vm52_vm1 = vcmp.gt.f32.partialorder %v690_v5, %v686_v3  ;;  %v704_v11 = vld [vmem:[#allocation2 + $0x30] sm:$0xff]  ;;  %v712_v14 = vld [vmem:[#allocation2 + $0x38] sm:$0xff]  ;;  %s637_s8 = smov 97   ;;  %s638_s9 = smov 127  }
  0x29   :  { %v702_v8 = vsel %vm51_vm0, %v688_v4, %v684_v2  ;;  %v69_v10 = vsel %vm51_vm0, 1, %v632_v9  ;;  %v708_v12 = vsel %vm52_vm1, %v690_v5, %v686_v3  ;;  %v70_v13 = vsel %vm52_vm1, 1, %v632_v9  ;;  %s611_s13 = scalar_lea.hbm %s952_s2, 16 }
  0x2a   :  { %193 = vrot.lane.b32.xlu0 %v680_v1, %s631_s6  ;;  %vm80_vm2 = vcmp.gt.f32.partialorder %v694_v6, %v702_v8  ;;  %vm152_vm3 = vcmp.ne.s32.totalorder %v680_v1, 0  ;;  %vm81_vm4 = vcmp.gt.f32.partialorder %v696_v7, %v708_v12  ;;  %vm154_vm5 = vcmp.ne.s32.totalorder %v680_v1, 16  ;;  %p612_p2 = scmp.ne.s32.totalorder %s952_s2, %s611_s13  ;;  %p615_p3 = scmp.lt.u32.totalorder %s611_s13, %s952_s2 }
  0x2b   :  { %v719_v15 = vsel %vm80_vm2, %v694_v6, %v702_v8  ;;  %v100_v16 = vsel %vm80_vm2, 2, %v69_v10  ;;  %v724_v17 = vsel %vm81_vm4, %v696_v7, %v708_v12  ;;  %v101_v18 = vsel %vm81_vm4, 2, %v70_v13  ;;  %vm736_vm10 = vmand %vm152_vm3, %vm154_vm5 }
  0x2c   :  { %vm111_vm6 = vcmp.gt.f32.partialorder %v704_v11, %v719_v15  ;;  %vm112_vm7 = vcmp.gt.f32.partialorder %v712_v14, %v724_v17  ;;  %vm634_vm1 = vmmov 1   ;;  %vm153_vm4 = vcmp.ne.s32.totalorder %v680_v1, 15  ;;  %p617_p4 = pnand %p615_p3, %p612_p2 }
  0x2d   :  { %v131_v19 = vsel %vm111_vm6, 3, %v100_v16  ;;  %v132_v20 = vsel %vm112_vm7, 3, %v101_v18  ;;  %vm156_vm5 = vcmp.ne.s32.totalorder %v680_v1, 31  ;;  %v203_v31 = vsel %vm736_vm10, 1, %v632_v9 }
  0x2e   :  { %vm237_vm8 = vcmp.eq.s32.totalorder %v131_v19, 1  ;;  %vm243_vm9 = vcmp.eq.s32.totalorder %v131_v19, 2  ;;  %vm238_vm11 = vcmp.eq.s32.totalorder %v132_v20, 1  ;;  %vm244_vm12 = vcmp.eq.s32.totalorder %v132_v20, 2 }
  0x2f   :  { %v741_v23 = vsel %vm237_vm8, 1.0, %v633_v22  ;;  %vm245_vm13 = vmor %vm243_vm9, %vm237_vm8  ;;  %v744_v24 = vsel %vm238_vm11, 1.0, %v633_v22  ;;  %vm371_vm15 = vcmp.eq.s32.totalorder %v131_v19, 3  ;;  %vm372_vm0 = vcmp.eq.s32.totalorder %v132_v20, 3 }
  0x30   :  { %vm246_vm14 = vmor %vm244_vm12, %vm238_vm11  ;;  %v509_v25 = vpack.i.bf16 %v744_v24, %v741_v23  ;;  %v758_v28 = vsel %vm371_vm15, 1.0, %v633_v22  ;;  %v761_v29 = vsel %vm372_vm0, 1.0, %v633_v22  ;;  %v481_v34 = vadd.s32 4294967295, %v680_v1 }
  0x31   :  { %vm247_vm2 = vmxor %vm245_vm13, %vm634_vm1  ;;  %v519_v32 = vpack.i.bf16 %v761_v29, %v758_v28  ;;  %v208_v35 = vadd.s32 1, %v680_v1  ;;  %vm192_vm9 = vcmask 1047808   ;;  %v93_v13 = vsub.f32 %v696_v7, %v724_v17 }
  0x32   :  { %vm248_vm3 = vmxor %vm246_vm14, %vm634_vm1  ;;  %v749_v26 = vsel %vm247_vm2, 1.0, %v633_v22  ;;  %510 = vrot.lane.b32.xlu0 %v509_v25, %s631_s6 }
  0x33   :  { %v755_v27 = vsel %vm248_vm3, 1.0, %v633_v22  ;;  %vm157_vm8 = vmand %vm153_vm4, %vm156_vm5 }
  0x34   :  { %v514_v30 = vpack.i.bf16 %v755_v27, %v749_v26  ;;  %v212_v33 = vsel %vm157_vm8, 1, %v632_v9 }
  0x36   :  { %515 = vrot.lane.b32.xlu1 %v514_v30, %s631_s6  ;;  %204 = vrot.lane.b32.xlu0 %v203_v31, %s635_s1 }
  0x3a   :  { %520 = vrot.lane.b32.xlu1 %v519_v32, %s631_s6  ;;  %213 = vrot.lane.b32.xlu0 %v212_v33, %s635_s1 }
  0x3e   :  { %200 = vrot.lane.b32.xlu1 %v481_v34, %s635_s1  ;;  %223 = vrot.lane.b32.xlu0 %v203_v31, %s636_s7 }
  0x42   :  { %209 = vrot.lane.b32.xlu1 %v208_v35, %s635_s1  ;;  %230 = vrot.lane.b32.xlu0 %v212_v33, %s636_s7 }
  0x46   :  { %220 = vrot.lane.b32.xlu1 %v481_v34, %s636_s7 }
  0x4a   :  { %227 = vrot.lane.b32.xlu1 %v208_v35, %s636_s7 }
  0x9c   :  { %v194_v36 = vpop.permute.xlu0 %193 }
  0x9d   :  { %v195_v37 = vsel %vm192_vm9, %v194_v36, %v680_v1 }
  0x9e   :  { %196 = vrot.lane.b32.xlu0 %v195_v37, %s631_s6 }
  0xa4   :  { %v511_v38 = vpop.permute.xlu0 %510 }
  0xa5   :  { %v513_v39 = vunpack.i.h.bf16 %v511_v38  ;;  %v512_v40 = vunpack.i.l.bf16 %v511_v38 }
  0xa7   :  { %v269_v42 = vsel %vm192_vm9, %v512_v40, %v741_v23  ;;  %v272_v43 = vsel %vm192_vm9, %v513_v39, %v744_v24 }
  0xa8   :  { %v516_v41 = vpop.permute.xlu1 %515  ;;  %v524_v46 = vpack.i.bf16 %v272_v43, %v269_v42  ;;  %v205_v56 = vpop.permute.xlu0 %204 }
  0xa9   :  { %v518_v44 = vunpack.i.h.bf16 %v516_v41  ;;  %v517_v45 = vunpack.i.l.bf16 %v516_v41  ;;  %vm206_vm10 = vcmp.ne.s32.totalorder %v205_v56, 0 }
  0xaa   :  { %525 = vrot.lane.b32.xlu1 %v524_v46, %s631_s6 }
  0xab   :  { %v321_v47 = vsel %vm192_vm9, %v517_v45, %v749_v26  ;;  %v324_v48 = vsel %vm192_vm9, %v518_v44, %v755_v27 }
  0xac   :  { %v521_v49 = vpop.permute.xlu1 %520  ;;  %v529_v50 = vpack.i.bf16 %v324_v48, %v321_v47  ;;  %v214_v57 = vpop.permute.xlu0 %213 }
  0xad   :  { %v523_v51 = vunpack.i.h.bf16 %v521_v49  ;;  %v522_v52 = vunpack.i.l.bf16 %v521_v49  ;;  %vm215_vm12 = vcmp.ne.s32.totalorder %v214_v57, 0 }
  0xae   :  { %530 = vrot.lane.b32.xlu0 %v529_v50, %s631_s6 }
  0xaf   :  { %v393_v53 = vsel %vm192_vm9, %v522_v52, %v758_v28  ;;  %v396_v54 = vsel %vm192_vm9, %v523_v51, %v761_v29  ;;  %v55_v52 = vsub.f32 %v684_v2, %v702_v8 }
  0xb0   :  { %v534_v55 = vpack.i.bf16 %v396_v54, %v393_v53  ;;  %v224_v58 = vpop.permute.xlu0 %223  ;;  %v201_v59 = vpop.permute.xlu1 %200  ;;  %v56_v53 = vsub.f32 %v686_v3, %v708_v12  ;;  %v61_v54 = vsub.f32 %v688_v4, %v702_v8 }
  0xb1   :  { %vm225_vm0 = vcmp.ne.s32.totalorder %v224_v58, 0  ;;  %v57_v56 = vmul.f32 1.442695, %v55_v52 }
  0xb2   :  { %535 = vrot.lane.b32.xlu1 %v534_v55, %s631_s6  ;;  %v62_v55 = vsub.f32 %v690_v5, %v708_v12  ;;  %v59_v57 = vmul.f32 1.442695, %v56_v53  ;;  %v63_v58 = vmul.f32 1.442695, %v61_v54  ;;  %v260_v54 = vrot.slane %v744_v24, 1 }
  0xb3   :  { %539 = vpow2.f32 %v57_v56 }
  0xb4   :  { %v231_v60 = vpop.permute.xlu0 %230  ;;  %v210_v61 = vpop.permute.xlu1 %209  ;;  %541 = vpow2.f32 %v59_v57  ;;  %v253_v57 = vrot.slane %v741_v23, 7 }
  0xb5   :  { %vm232_vm2 = vcmp.ne.s32.totalorder %v231_v60, 0  ;;  %v65_v60 = vmul.f32 1.442695, %v62_v55  ;;  %543 = vpow2.f32 %v63_v58  ;;  %v259_v58 = vrot.slane %v741_v23, 1 }
  0xb7   :  { %545 = vpow2.f32 %v65_v60 }
  0xb8   :  { %v221_v9 = vpop.permute.xlu1 %220 }
  0xbc   :  { %v228_v10 = vpop.permute.xlu1 %227 }
 0x110   :  { %v197_v62 = vpop.permute.xlu0 %196 }
 0x111   :  { %v198_v63 = vsel %vm192_vm9, %v197_v62, %v680_v1  ;;  %v826_v62 = vshrl.u32 %v147_v0, 7  ;;  %v844_v0 = vsel %vm112_vm7, %v712_v14, %v724_v17 }
 0x112   :  { %vm202_vm11 = vcmp.eq.s32.totalorder %v198_v63, %v201_v59  ;;  %vm211_vm13 = vcmp.eq.s32.totalorder %v198_v63, %v210_v61  ;;  %vm222_vm1 = vcmp.eq.s32.totalorder %v198_v63, %v221_v9  ;;  %vm229_vm3 = vcmp.eq.s32.totalorder %v198_v63, %v228_v10 }
 0x113   :  { %vm207_vm14 = vmand %vm202_vm11, %vm206_vm10  ;;  %v84_v59 = vsub.f32 %v702_v8, %v719_v15  ;;  %v85_v61 = vsub.f32 %v708_v12, %v724_v17  ;;  %v92_v9 = vsub.f32 %v694_v6, %v719_v15  ;;  %v837_v8 = vsel %vm111_vm6, %v704_v11, %v719_v15 }
 0x114   :  { %vm216_vm15 = vmand %vm211_vm13, %vm215_vm12  ;;  %vm160_vm6 = vcmp.lt.s32.totalorder %v826_v62, 1  ;;  %vm179_vm7 = vcmp.lt.s32.totalorder %v826_v62, 7 }
 0x115   :  { %vm217_vm4 = vmor %vm207_vm14, %vm216_vm15  ;;  %v86_v63 = vmul.f32 1.442695, %v84_v59  ;;  %v88_v10 = vmul.f32 1.442695, %v85_v61  ;;  %v94_v12 = vmul.f32 1.442695, %v92_v9 }
 0x116   :  { %vm793_vm5 = vmand %vm222_vm1, %vm225_vm0  ;;  %v482_v19 = vsel %vm217_vm4, 1.0, %v633_v22 }
 0x117   :  { %vm233_vm8 = vmand %vm229_vm3, %vm232_vm2  ;;  %547 = vpow2.f32 %v86_v63 }
 0x118   :  { %vm234_vm10 = vmor %vm793_vm5, %vm233_vm8  ;;  %549 = vpow2.f32 %v88_v10 }
 0x119   :  { %v483_v32 = vsel %vm234_vm10, 1.0, %v633_v22  ;;  %551 = vpow2.f32 %v94_v12  ;;  %v262_v12 = vsel %vm179_vm7, %v260_v54, %v259_v58 }
 0x11c   :  { %v526_v16 = vpop.permute.xlu1 %525 }
 0x11d   :  { %v528_v1 = vunpack.i.h.bf16 %v526_v16  ;;  %v527_v18 = vunpack.i.l.bf16 %v526_v16  ;;  %v115_v16 = vsub.f32 %v719_v15, %v837_v8  ;;  %v124_v15 = vsub.f32 %v712_v14, %v844_v0 }
 0x11f   :  { %v278_v20 = vsel %vm192_vm9, %v528_v1, %v744_v24  ;;  %v277_v21 = vsel %vm192_vm9, %v527_v18, %v741_v23  ;;  %v149_v1 = vadd.s32 8, %v826_v62  ;;  %v96_v18 = vmul.f32 1.442695, %v93_v13 }
 0x120   :  { %v280_v25 = vmul.f32 %v482_v19, %v278_v20  ;;  %v279_v30 = vmul.f32 %v482_v19, %v277_v21  ;;  %v531_v31 = vpop.permute.xlu0 %530  ;;  %v292_v36 = vmul.f32 %v483_v32, %v278_v20  ;;  %v291_v37 = vmul.f32 %v483_v32, %v277_v21  ;;  %v540_v20 = vpop.eup %539 }
 0x121   :  { %v533_v38 = vunpack.i.h.bf16 %v531_v31  ;;  %v532_v39 = vunpack.i.l.bf16 %v531_v31  ;;  %v158_v21 = vrot.slane %v826_v62, 7  ;;  %v542_v31 = vpop.eup %541  ;;  %553 = vpow2.f32 %v96_v18 }
 0x122   :  { %285 = vrot.lane.b32.xlu1 %v280_v25, %s637_s8  ;;  %283 = vrot.lane.b32.xlu0 %v279_v30, %s637_s8  ;;  %v117_v25 = vmul.f32 1.442695, %v115_v16  ;;  %v123_v30 = vsub.f32 %v704_v11, %v837_v8  ;;  %v261_v18 = vsel %vm179_vm7, %v259_v58, %v260_v54  ;;  %v40_v54 = vld [vmem:[#allocation5] sm:$0xff] }
 0x123   :  { %v330_v44 = vsel %vm192_vm9, %v533_v38, %v755_v27  ;;  %v329_v45 = vsel %vm192_vm9, %v532_v39, %v749_v26  ;;  %v168_v38 = vadd.s32 1, %v149_v1  ;;  %vm44_vm8 = vcmp.eq.s32.totalorder %v40_v54, 0 }
 0x124   :  { %v536_v33 = vpop.permute.xlu1 %535  ;;  %v332_v46 = vmul.f32 %v482_v19, %v330_v44  ;;  %v331_v47 = vmul.f32 %v482_v19, %v329_v45  ;;  %v344_v48 = vmul.f32 %v483_v32, %v330_v44  ;;  %v343_v49 = vmul.f32 %v483_v32, %v329_v45 }
 0x125   :  { %v538_v34 = vunpack.i.h.bf16 %v536_v33  ;;  %v537_v35 = vunpack.i.l.bf16 %v536_v33  ;;  %555 = vpow2.f32 %v117_v25  ;;  %v125_v39 = vmul.f32 1.442695, %v123_v30 }
 0x126   :  { %297 = vrot.lane.b32.xlu1 %v292_v36, %s638_s9  ;;  %295 = vrot.lane.b32.xlu0 %v291_v37, %s638_s9  ;;  %v476_v37 = vadd.s32 4294967295, %v149_v1  ;;  %v475_v45 = vadd.s32 4294967295, %v826_v62  ;;  %v311_v25 = vrot.slane %v749_v26, 1  ;;  %v312_v30 = vrot.slane %v755_v27, 1 }
 0x127   :  { %v402_v40 = vsel %vm192_vm9, %v538_v34, %v761_v29  ;;  %v401_v41 = vsel %vm192_vm9, %v537_v35, %v758_v28  ;;  %v544_v34 = vpop.eup %543  ;;  %v178_v35 = vrot.slane %v149_v1, 1 }
 0x128   :  { %v404_v42 = vmul.f32 %v482_v19, %v402_v40  ;;  %v403_v43 = vmul.f32 %v482_v19, %v401_v41  ;;  %v416_v50 = vmul.f32 %v483_v32, %v402_v40  ;;  %v415_v51 = vmul.f32 %v483_v32, %v401_v41  ;;  %v546_v36 = vpop.eup %545 }
 0x129   :  { %v116_v19 = vsub.f32 %v724_v17, %v844_v0  ;;  %v159_v32 = vrot.slane %v149_v1, 7  ;;  %v177_v17 = vrot.slane %v826_v62, 1  ;;  %v67_v41 = vadd.f32 %v544_v34, %v540_v20 }
 0x12a   :  { %409 = vrot.lane.b32.xlu1 %v404_v42, %s637_s8  ;;  %407 = vrot.lane.b32.xlu0 %v403_v43, %s637_s8  ;;  %v127_v42 = vmul.f32 1.442695, %v124_v15  ;;  %v548_v43 = vpop.eup %547  ;;  %v306_v20 = vrot.slane %v755_v27, 7 }
 0x12b   :  { %v119_v33 = vmul.f32 1.442695, %v116_v19  ;;  %v161_v40 = vsel %vm160_vm6, %v158_v21, %v159_v32  ;;  %v181_v44 = vsel %vm179_vm7, %v178_v35, %v177_v17  ;;  %v90_v52 = vmul.f32 %v548_v43, %v67_v41 }
 0x12c   :  { %vm166_vm9 = vcmp.eq.s32.totalorder %v161_v40, %v476_v37  ;;  %vm170_vm11 = vcmp.eq.s32.totalorder %v161_v40, %v168_v38  ;;  %vm183_vm12 = vcmp.eq.s32.totalorder %v181_v44, %v476_v37  ;;  %vm185_vm13 = vcmp.eq.s32.totalorder %v181_v44, %v168_v38 }
 0x12d   :  { %557 = vpow2.f32 %v119_v33  ;;  %vm172_vm0 = vmor %vm166_vm9, %vm170_vm11  ;;  %v305_v19 = vrot.slane %v749_v26, 7  ;;  %v377_v38 = vrot.slane %v758_v28, 7  ;;  %v383_v41 = vrot.slane %v758_v28, 1 }
 0x12e   :  { %337 = vrot.lane.b32.xlu1 %v332_v46, %s637_s8  ;;  %335 = vrot.lane.b32.xlu0 %v331_v47, %s637_s8  ;;  %v167_v46 = vadd.s32 1, %v826_v62  ;;  %v68_v47 = vadd.f32 %v546_v36, %v542_v31  ;;  %559 = vpow2.f32 %v125_v39  ;;  %vm187_vm3 = vmor %vm183_vm12, %vm185_vm13  ;;  %v478_v61 = vsel %vm172_vm0, 1.0, %v633_v22 }
 0x12f   :  { %561 = vpow2.f32 %v127_v42  ;;  %v480_v10 = vsel %vm187_vm3, 1.0, %v633_v22  ;;  %v378_v39 = vrot.slane %v761_v29, 7  ;;  %v384_v42 = vrot.slane %v761_v29, 1 }
 0x130   :  { %v307_v43 = vsel %vm160_vm6, %v305_v19, %v306_v20  ;;  %v314_v44 = vsel %vm179_vm7, %v312_v30, %v311_v25  ;;  %vm133_vm12 = vcmp.eq.s32.totalorder %v40_v54, 3 }
 0x132   :  { %349 = vrot.lane.b32.xlu1 %v344_v48, %s638_s9  ;;  %347 = vrot.lane.b32.xlu0 %v343_v49, %s638_s9  ;;  %v550_v48 = vpop.eup %549  ;;  %v254_v49 = vrot.slane %v744_v24, 7 }
 0x133   :  { %v552_v53 = vpop.eup %551  ;;  %v91_v55 = vmul.f32 %v550_v48, %v68_v47 }
 0x134   :  { %v554_v56 = vpop.eup %553  ;;  %v98_v59 = vadd.f32 %v552_v53, %v90_v52  ;;  %v255_v13 = vsel %vm160_vm6, %v253_v57, %v254_v49  ;;  %v256_v16 = vsel %vm160_vm6, %v254_v49, %v253_v57  ;;  %v379_v52 = vsel %vm160_vm6, %v377_v38, %v378_v39 }
 0x135   :  { %v556_v60 = vpop.eup %555  ;;  %v99_v63 = vadd.f32 %v554_v56, %v91_v55  ;;  %v258_v33 = vmul.f32 %v478_v61, %v255_v13  ;;  %v380_v53 = vsel %vm160_vm6, %v378_v39, %v377_v38  ;;  %v41_v55 = vld [vmem:[#allocation5 + $0x8] sm:$0xff]  ;;  %v310_v56 = vmul.f32 %v478_v61, %v307_v43 }
 0x136   :  { %421 = vrot.lane.b32.xlu1 %v416_v50, %s638_s9  ;;  %419 = vrot.lane.b32.xlu0 %v415_v51, %s638_s9  ;;  %v162_v50 = vsel %vm160_vm6, %v159_v32, %v158_v21  ;;  %v180_v51 = vsel %vm179_vm7, %v177_v17, %v178_v35  ;;  %v121_v31 = vmul.f32 %v556_v60, %v98_v59  ;;  %vm45_vm10 = vcmp.eq.s32.totalorder %v41_v55, 0 }
 0x137   :  { %vm165_vm14 = vcmp.eq.s32.totalorder %v162_v50, %v475_v45  ;;  %vm169_vm15 = vcmp.eq.s32.totalorder %v162_v50, %v167_v46  ;;  %vm182_vm1 = vcmp.eq.s32.totalorder %v180_v51, %v475_v45  ;;  %vm184_vm2 = vcmp.eq.s32.totalorder %v180_v51, %v167_v46  ;;  %v558_v9 = vpop.eup %557 }
 0x138   :  { %vm171_vm4 = vmor %vm165_vm14, %vm169_vm15  ;;  %v560_v32 = vpop.eup %559  ;;  %v122_v15 = vmul.f32 %v558_v9, %v99_v63  ;;  %v264_v35 = vmul.f32 %v480_v10, %v262_v12  ;;  %v308_v45 = vsel %vm160_vm6, %v306_v20, %v305_v19  ;;  %v313_v46 = vsel %vm179_vm7, %v311_v25, %v312_v30 }
 0x139   :  { %vm186_vm5 = vmor %vm182_vm1, %vm184_vm2  ;;  %v477_v1 = vsel %vm171_vm4, 1.0, %v633_v22  ;;  %v562_v34 = vpop.eup %561  ;;  %v129_v47 = vadd.f32 %v560_v32, %v121_v31  ;;  %v316_v57 = vmul.f32 %v480_v10, %v314_v44  ;;  %v386_v63 = vsel %vm179_vm7, %v384_v42, %v383_v41 }
 0x13a   :  { %v479_v21 = vsel %vm186_vm5, 1.0, %v633_v22  ;;  %v257_v37 = vmul.f32 %v477_v1, %v256_v16  ;;  %v130_v48 = vadd.f32 %v562_v34, %v122_v15  ;;  %v266_v49 = vmax.f32 %v258_v33, %v264_v35 }
 0x13b   :  { %v263_v40 = vmul.f32 %v479_v21, %v261_v18  ;;  %v309_v58 = vmul.f32 %v477_v1, %v308_v45  ;;  %v315_v59 = vmul.f32 %v479_v21, %v313_v46  ;;  %v385_v9 = vsel %vm179_vm7, %v383_v41, %v384_v42 }
 0x13c   :  { %563 = vlog2.f32 %v129_v47  ;;  %v382_v13 = vmul.f32 %v478_v61, %v379_v52  ;;  %v381_v16 = vmul.f32 %v477_v1, %v380_v53  ;;  %vm71_vm6 = vcmp.eq.s32.totalorder %v40_v54, 1 }
 0x13d   :  { %v265_v60 = vmax.f32 %v257_v37, %v263_v40  ;;  %565 = vlog2.f32 %v130_v48  ;;  %vm72_vm9 = vcmp.eq.s32.totalorder %v41_v55, 1  ;;  %v388_v19 = vmul.f32 %v480_v10, %v386_v63 }
 0x13e   :  { %v387_v20 = vmul.f32 %v479_v21, %v385_v9  ;;  %v318_v25 = vmax.f32 %v310_v56, %v316_v57  ;;  %v317_v30 = vmax.f32 %v309_v58, %v315_v59  ;;  %v46_v33 = vsel %vm44_vm8, %v684_v2, 0.0 }
 0x13f   :  { %v47_v62 = vsel %vm45_vm10, %v686_v3, 0.0  ;;  %v73_v15 = vsel %vm71_vm6, %v688_v4, 0.0  ;;  %v74_v34 = vsel %vm72_vm9, %v690_v5, 0.0  ;;  %vm102_vm7 = vcmp.eq.s32.totalorder %v40_v54, 2 }
 0x140   :  { %vm103_vm11 = vcmp.eq.s32.totalorder %v41_v55, 2  ;;  %v390_v10 = vmax.f32 %v382_v13, %v388_v19  ;;  %v389_v21 = vmax.f32 %v381_v16, %v387_v20  ;;  %v75_v38 = vadd.f32 %v73_v15, %v46_v33 }
 0x141   :  { %v76_v39 = vadd.f32 %v74_v34, %v47_v62  ;;  %v105_v2 = vsel %vm103_vm11, %v696_v7, 0.0  ;;  %vm134_vm13 = vcmp.eq.s32.totalorder %v41_v55, 3  ;;  %vm445_vm2 = vcmask 261120  }
 0x142   :  { %v136_v7 = vsel %vm134_vm13, %v712_v14, 0.0 }
 0x143   :  { %v107_v47 = vadd.f32 %v105_v2, %v76_v39 }
 0x145   :  { %v138_v63 = vadd.f32 %v136_v7, %v107_v47 }
 0x146   :  { %v564_v4 = vpop.eup %563 }
 0x147   :  { %v566_v43 = vpop.eup %565  ;;  %v140_v56 = vmul.f32 0.6931472, %v564_v4 }
 0x148   :  { %v142_v57 = vmul.f32 0.6931472, %v566_v43 }
 0x14a   :  { %v144_v19 = vadd.f32 %v142_v57, %v844_v0 }
 0x194   :  { %v286_v17 = vpop.permute.xlu1 %285  ;;  %v284_v36 = vpop.permute.xlu0 %283 }
 0x195   :  { %v290_v31 = vmax.f32 %v266_v49, %v286_v17  ;;  %v289_v32 = vmax.f32 %v265_v60, %v284_v36  ;;  %v104_v17 = vsel %vm102_vm7, %v694_v6, 0.0  ;;  %v135_v6 = vsel %vm133_vm12, %v704_v11, 0.0 }
 0x196   :  { %v106_v46 = vadd.f32 %v104_v17, %v75_v38 }
 0x198   :  { %v298_v50 = vpop.permute.xlu1 %297  ;;  %v296_v51 = vpop.permute.xlu0 %295  ;;  %v137_v60 = vadd.f32 %v135_v6, %v106_v46 }
 0x199   :  { %v302_v61 = vmax.f32 %v290_v31, %v298_v50  ;;  %v301_v1 = vmax.f32 %v289_v32, %v296_v51 }
 0x19b   :  { %v304_v5 = vmax.f32 %v744_v24, %v302_v61  ;;  %v303_v40 = vmax.f32 %v741_v23, %v301_v1 }
 0x19c   :  { %v410_v12 = vpop.permute.xlu1 %409  ;;  %v408_v18 = vpop.permute.xlu0 %407 }
 0x19d   :  { %v414_v48 = vmax.f32 %v390_v10, %v410_v12  ;;  %v413_v49 = vmax.f32 %v389_v21, %v408_v18  ;;  %v360_v52 = vmul.f32 %v755_v27, %v304_v5  ;;  %v359_v53 = vmul.f32 %v749_v26, %v303_v40 }
 0x19e   :  { %v431_v16 = vmul.f32 %v758_v28, %v303_v40  ;;  %v143_v18 = vadd.f32 %v140_v56, %v837_v8 }
 0x1a0   :  { %v338_v35 = vpop.permute.xlu1 %337  ;;  %v336_v37 = vpop.permute.xlu0 %335  ;;  %v145_v62 = vsub.f32 %v143_v18, %v137_v60 }
 0x1a1   :  { %v342_v36 = vmax.f32 %v318_v25, %v338_v35  ;;  %v341_v3 = vmax.f32 %v317_v30, %v336_v37 }
 0x1a4   :  { %v350_v41 = vpop.permute.xlu1 %349  ;;  %v348_v42 = vpop.permute.xlu0 %347 }
 0x1a5   :  { %v354_v44 = vmax.f32 %v342_v36, %v350_v41  ;;  %v353_v45 = vmax.f32 %v341_v3, %v348_v42 }
 0x1a7   :  { %v356_v50 = vmax.f32 %v755_v27, %v354_v44  ;;  %v355_v51 = vmax.f32 %v749_v26, %v353_v45  ;;  %v432_v26 = vmul.f32 %v761_v29, %v304_v5 }
 0x1a8   :  { %v422_v54 = vpop.permute.xlu1 %421  ;;  %v420_v55 = vpop.permute.xlu0 %419 }
 0x1a9   :  { %v358_v58 = vmul.f32 %v744_v24, %v356_v50  ;;  %v357_v11 = vmul.f32 %v741_v23, %v355_v51  ;;  %v426_v59 = vmax.f32 %v414_v48, %v422_v54  ;;  %v425_v14 = vmax.f32 %v413_v49, %v420_v55 }
 0x1ab   :  { %v362_v9 = vadd.f32 %v360_v52, %v358_v58  ;;  %v361_v13 = vadd.f32 %v359_v53, %v357_v11  ;;  %v428_v12 = vmax.f32 %v761_v29, %v426_v59  ;;  %v427_v27 = vmax.f32 %v758_v28, %v425_v14 }
 0x1ac   :  { %v146_v29 = vsub.f32 %v144_v19, %v138_v63 }
 0x1ad   :  { %vm364_vm14 = vcmp.ge.f32.partialorder %v362_v9, 1.0  ;;  %vm363_vm15 = vcmp.ge.f32.partialorder %v361_v13, 1.0  ;;  %v430_v20 = vmul.f32 %v744_v24, %v428_v12  ;;  %v429_v25 = vmul.f32 %v741_v23, %v427_v27 }
 0x1ae   :  { %v489_v30 = vsel %vm364_vm14, 1.0, %v633_v22  ;;  %v488_v31 = vsel %vm363_vm15, 1.0, %v633_v22 }
 0x1af   :  { %v434_v32 = vadd.f32 %v432_v26, %v430_v20  ;;  %v433_v33 = vadd.f32 %v431_v16, %v429_v25  ;;  %v370_v15 = vmax.f32 %v489_v30, 0.0  ;;  %v369_v28 = vmax.f32 %v488_v31, 0.0 }
 0x1b1   :  { %vm436_vm0 = vcmp.ge.f32.partialorder %v434_v32, 1.0  ;;  %vm435_vm1 = vcmp.ge.f32.partialorder %v433_v33, 1.0 }
 0x1b2   :  { %v492_v8 = vsel %vm435_vm1, 1.0, %v633_v22  ;;  %v493_v0 = vsel %vm436_vm0, 1.0, %v633_v22 }
 0x1b3   :  { %v441_v34 = vmax.f32 %v369_v28, %v492_v8  ;;  %v442_v24 = vmax.f32 %v370_v15, %v493_v0 }
 0x1b5   :  { %v443_v23 = vmul.f32 %v441_v34, %v145_v62  ;;  %v444_v61 = vmul.f32 %v442_v24, %v146_v29 }
 0x1b7   :  { %v446_v1 = vsel %vm445_vm2, %v443_v23, 0.0  ;;  %v447_v35 = vsel %vm445_vm2, %v444_v61, 0.0 }
 0x1b8   :  { %v448_v37 = vadd.f32 %v447_v35, %v446_v1 }
 0x1ba   :  { %449 = vadd.xlane.f32.xlu0 %v448_v37 }
 0x247   :  { %v450_v10 = vpop.xlane.xlu0 %449 }
 0x248   :  { %v451_v21 = vrot.slane %v450_v10, 4 }
 0x24a   :  { %v452_v38 = vadd.f32 %v451_v21, %v450_v10 }
 0x24c   :  { %v453_v39 = vrot.slane %v452_v38, 2 }
 0x24e   :  { %v454_v17 = vadd.f32 %v453_v39, %v452_v38 }
 0x250   :  { %v455_v2 = vrot.slane %v454_v17, 1 }
 0x252   :  { %v456_v36 = vadd.f32 %v455_v2, %v454_v17 }
 0x254   :  { %494 = vpush %v456_v36 }
 0x285   :  { %s495_s10 = spop %494 }
 0x286   :  { %459 = sst [smem:[#allocation7]] %s495_s10 }
 0x287   :  { %620 = shalt.err (!%p617_p4)
}
 0x288   :  { %s639_s18 = smov [#allocation7]  }
 0x289   :  { %467 = dma.smem_to_hbm %s639_s18, 16, %s952_s2, [#allocation4]  }
 0x28a   :  { %625 = dma.done.wait [#allocation4], 16  }
 0x28b   :  { %626 = vsyncadd [#allocation4], 4294967280 }
 0x28c   :  { %471 = sfence }
 0x28d   :  { %472 = vsyncpa [#allocation3], 1 }
 0x28e   :  { %473 = vsyncpa [#allocation6], 1 }
 0x28f   :  { %474 = vsyncpa [#allocation4], 1 }

// kernel: tpu_custom_call.1
= control target key start
LH: loop header
LB: loop body
LE: loop exit
PB: predicated region body
PF: predicated region fallthrough
CT: control target
= control target key end

     0   :  { %7 = vsyncpa [#allocation3], 0  ;;  %s1123_s0 = inlined_call_operand.hbm [shape: f32[1,4,16,32], index: 0, kind: input, shape index: {}]   ;;  %s1124_s1 = inlined_call_operand.hbm [shape: s32[1,16,32], index: 1, kind: input, shape index: {}]   ;;  %s1125_s2 = inlined_call_operand.hbm [shape: f32[1,1], index: 2, kind: output, shape index: {}]  }
   0x1   :  { %8 = vsyncpa [#allocation6], 0 }
   0x2   :  { %9 = vsyncpa [#allocation4], 0  ;;  %s809_s9 = smov [#allocation2]   ;;  %s749_s13 = scalar_lea.hbm %s1123_s0, 1024 }
   0x3   :  { %s15_s10 = sshll.u32 %s809_s9, 4  ;;  %p750_p0 = scmp.ne.s32.totalorder %s1123_s0, %s749_s13  ;;  %s16_s10 = int_to_ptr.vmem [resolvable:$true] %s15_s10 }
   0x4   :  { %p753_p1 = scmp.lt.u32.totalorder %s749_s13, %s1123_s0 }
   0x6   :  { %p755_p2 = pnand %p753_p1, %p750_p0 }
   0x8   :  { %758 = shalt.err (!%p755_p2)
}
   0x9   :  { %s759_s18 = scalar_lea.vmem %s16_s10, 1024  ;;  %p764_p4 = scmp.lt.s32.totalorder %s16_s10, %s16_s10 }
   0xa   :  { %p760_p3 = scmp.ne.s32.totalorder %s16_s10, %s759_s18  ;;  %p765_p5 = scmp.lt.s32.totalorder %s759_s18, %s759_s18 }
   0xc   :  { %p766_p6 = por %p765_p5, %p764_p4 }
   0xe   :  { %p767_p7 = pnand %p766_p6, %p760_p3 }
  0x10   :  { %770 = shalt.err (!%p767_p7)
}
  0x11   :  { %s810_s19 = smov 128   ;;  %s811_s20 = smov 8  }
  0x12   :  { %21 = dma.hbm_to_vmem [thread:$0]  %s1123_s0, 1024, %s16_s10, [#allocation3], %s810_s19, %s810_s19, %s811_s20  }
  0x13   :  { %s812_s23 = smov [#allocation5]   ;;  %s771_s27 = scalar_lea.hbm %s1124_s1, 256 }
  0x14   :  { %s27_s24 = sshll.u32 %s812_s23, 4  ;;  %p772_p8 = scmp.ne.s32.totalorder %s1124_s1, %s771_s27  ;;  %s28_s24 = int_to_ptr.vmem [resolvable:$true] %s27_s24 }
  0x15   :  { %p775_p9 = scmp.lt.u32.totalorder %s771_s27, %s1124_s1 }
  0x17   :  { %p777_p10 = pnand %p775_p9, %p772_p8 }
  0x19   :  { %780 = shalt.err (!%p777_p10)
}
  0x1a   :  { %s781_s4 = scalar_lea.vmem %s28_s24, 256  ;;  %p786_p12 = scmp.lt.s32.totalorder %s28_s24, %s28_s24 }
  0x1b   :  { %p782_p11 = scmp.ne.s32.totalorder %s28_s24, %s781_s4  ;;  %p787_p13 = scmp.lt.s32.totalorder %s781_s4, %s781_s4 }
  0x1d   :  { %p788_p0 = por %p787_p13, %p786_p12 }
  0x1f   :  { %p789_p1 = pnand %p788_p0, %p782_p11 }
  0x21   :  { %792 = shalt.err (!%p789_p1)
}
  0x22   :  { %33 = dma.hbm_to_vmem [thread:$0]  %s1124_s1, 256, %s28_s24, [#allocation6], %s810_s19, %s810_s19, %s811_s20  }
  0x23   :  { %803 = dma.done.wait [#allocation3], 1024  }
  0x24   :  { %804 = vsyncadd [#allocation3], 4294966272 }
  0x25   :  { %805 = dma.done.wait [#allocation6], 256  }
  0x26   :  { %806 = vsyncadd [#allocation6], 4294967040  ;;  %v148_v0 = vlaneseq  ;;  %v813_v1 = vmov 0.0   ;;  %vm1128_vm0 = vmmov 0   ;;  %v864_v8 = vld [vmem:[#allocation2] sm:$0xff]  ;;  %v866_v9 = vld [vmem:[#allocation2 + $0x8] sm:$0xff] }
  0x27   :  { %657 = vmatprep.subr.bf16.mxu1 %v813_v1  ;;  %665 = vmatprep.subr.bf16.mxu0 %v813_v1  ;;  %v868_v12 = vld [vmem:[#allocation2 + $0x10] sm:$0xff]  ;;  %v870_v13 = vld [vmem:[#allocation2 + $0x18] sm:$0xff]  ;;  %vm815_vm6 = vmmov 1   ;;  %v881_v17 = vld [vmem:[#allocation2 + $0x20] sm:$0xff]  ;;  %v816_v22 = vmov 0   ;;  %s793_s8 = scalar_lea.hbm %s1125_s2, 16 }
  0x28   :  { %v149_v2 = vshrl.u32 %v148_v0, 7  ;;  %v152_v3 = vand.u32 127, %v148_v0  ;;  %667 = vmatprep.mubr.msk.bf16.mxu0 %vm1128_vm0, %v813_v1  ;;  %661 = vmatprep.mubr.msk.bf16.mxu1 %vm1128_vm0, %v813_v1  ;;  %vm52_vm4 = vcmp.gt.f32.partialorder %v868_v12, %v864_v8  ;;  %vm53_vm5 = vcmp.gt.f32.partialorder %v870_v13, %v866_v9  ;;  %v890_v19 = vld [vmem:[#allocation2 + $0x28] sm:$0xff]  ;;  %v905_v26 = vld [vmem:[#allocation2 + $0x30] sm:$0xff]  ;;  %v918_v32 = vld [vmem:[#allocation2 + $0x38] sm:$0xff]  ;;  %p794_p2 = scmp.ne.s32.totalorder %s1125_s2, %s793_s8  ;;  %p797_p3 = scmp.lt.u32.totalorder %s793_s8, %s1125_s2 }
  0x29   :  { %v879_v16 = vsel %vm52_vm4, %v868_v12, %v864_v8  ;;  %v888_v18 = vsel %vm53_vm5, %v870_v13, %v866_v9  ;;  %v70_v23 = vsel %vm52_vm4, 1, %v816_v22  ;;  %v71_v25 = vsel %vm53_vm5, 1, %v816_v22 }
  0x2a   :  { %v150_v4 = vadd.s32 8, %v149_v2  ;;  %v153_v5 = vsub.s32 %v149_v2, %v152_v3  ;;  %vm184_vm1 = vcmp.eq.s32.totalorder %v152_v3, 16  ;;  %v168_v14 = vadd.s32 16, %v149_v2  ;;  %p799_p4 = pnand %p797_p3, %p794_p2 }
  0x2b   :  { %v169_v20 = vadd.s32 24, %v149_v2  ;;  %vm81_vm11 = vcmp.gt.f32.partialorder %v881_v17, %v879_v16  ;;  %vm82_vm13 = vcmp.gt.f32.partialorder %v890_v19, %v888_v18  ;;  %v817_v27 = vmov 1.0|1.0  }
  0x2c   :  { %v154_v6 = vsub.s32 %v150_v4, %v152_v3  ;;  %v156_v7 = vsub.s32 0, %v153_v5  ;;  %vm181_vm2 = vcmp.eq.s32.totalorder %v150_v4, 15  ;;  %v170_v21 = vsub.s32 %v168_v14, %v152_v3 }
  0x2d   :  { %vm186_vm3 = vmand %vm181_vm2, %vm184_vm1  ;;  %v912_v28 = vsel %vm81_vm11, %v881_v17, %v879_v16  ;;  %v171_v29 = vsub.s32 %v169_v20, %v152_v3  ;;  %vm201_vm14 = vcmp.eq.s32.totalorder %v152_v3, 15  ;;  %v916_v30 = vsel %vm82_vm13, %v890_v19, %v888_v18 }
  0x2e   :  { %v592_v10 = vmin.u32 %v156_v7, %v153_v5  ;;  %v159_v11 = vsub.s32 0, %v154_v6  ;;  %vm190_vm7 = vmxor %vm186_vm3, %vm815_vm6  ;;  %v101_v31 = vsel %vm81_vm11, 2, %v70_v23  ;;  %v173_v33 = vsub.s32 0, %v170_v21 }
  0x2f   :  { %vm199_vm15 = vcmp.eq.s32.totalorder %v168_v14, 16  ;;  %v102_v34 = vsel %vm82_vm13, 2, %v71_v25  ;;  %vm1127_vm1 = vcmp.gt.f32.partialorder %v905_v26, %v912_v28  ;;  %vm1126_vm2 = vcmp.gt.f32.partialorder %v918_v32, %v916_v30 }
  0x30   :  { %v593_v15 = vmin.u32 %v159_v11, %v154_v6  ;;  %vm161_vm8 = vcmp.le.s32.totalorder %v592_v10, 1  ;;  %v132_v35 = vsel %vm1127_vm1, 3, %v101_v31  ;;  %v176_v36 = vsub.s32 0, %v171_v29  ;;  %vm204_vm3 = vmand %vm199_vm15, %vm201_vm14 }
  0x31   :  { %v133_v37 = vsel %vm1126_vm2, 3, %v102_v34  ;;  %vm230_vm4 = vcmp.eq.s32.totalorder %v132_v35, 2  ;;  %v596_v38 = vmin.u32 %v173_v33, %v170_v21  ;;  %v594_v39 = vsel %vm161_vm8, 1.0, %v813_v1  ;;  %vm208_vm11 = vmxor %vm204_vm3, %vm815_vm6 }
  0x32   :  { %vm162_vm9 = vcmp.le.s32.totalorder %v593_v15, 1  ;;  %vm231_vm5 = vcmp.eq.s32.totalorder %v133_v37, 2  ;;  %v597_v42 = vmin.u32 %v176_v36, %v171_v29  ;;  %vm447_vm2 = vcmp.eq.s32.totalorder %v132_v35, 3 }
  0x33   :  { %vm194_vm10 = vmand %vm162_vm9, %vm190_vm7  ;;  %v595_v40 = vsel %vm162_vm9, 1.0, %v813_v1  ;;  %vm224_vm7 = vcmp.eq.s32.totalorder %v132_v35, 1  ;;  %vm448_vm1 = vcmp.eq.s32.totalorder %v133_v37, 3  ;;  %v979_v51 = vsel %vm447_vm2, 1.0, %v813_v1 }
  0x34   :  { %vm896_vm12 = vmpackc.low %vm194_vm10, %vm161_vm8  ;;  %vm225_vm10 = vcmp.eq.s32.totalorder %v133_v37, 1  ;;  %v941_v43 = vsel %vm224_vm7, 1.0, %v813_v1  ;;  %vm178_vm8 = vcmp.le.s32.totalorder %v596_v38, 1  ;;  %v167_v46 = vpack.c.bf16 %v595_v40, %v594_v39 }
  0x35   :  { %658 = vmatpush3.bf16.msk.msra.mxu1 %vm896_vm12, %v817_v27  ;;  %vm936_vm13 = vmor %vm230_vm4, %vm224_vm7  ;;  %v944_v44 = vsel %vm225_vm10, 1.0, %v813_v1  ;;  %vm179_vm15 = vcmp.le.s32.totalorder %v597_v42, 1  ;;  %vm286_vm4 = vcmask 130048   ;;  %v983_v52 = vsel %vm448_vm1, 1.0, %v813_v1 }
  0x36   :  { %659 = vmatprep.subr.bf16.mxu1 %v813_v1  ;;  %vm946_vm14 = vmor %vm231_vm5, %vm225_vm10  ;;  %v240_v48 = vpack.c.bf16 %v944_v44, %v941_v43  ;;  %v453_v55 = vpack.c.bf16 %v983_v52, %v979_v51  ;;  %v56_v57 = vsub.f32 %v864_v8, %v879_v16  ;;  %v62_v58 = vsub.f32 %v868_v12, %v879_v16 }
  0x37   :  { %vm611_vm9 = vmpackc.low %vm225_vm10, %vm224_vm7  ;;  %vm241_vm7 = vcmask 261120   ;;  %v57_v59 = vsub.f32 %v866_v9, %v888_v18  ;;  %v63_v60 = vsub.f32 %v870_v13, %v888_v18  ;;  %v85_v63 = vsub.f32 %v879_v16, %v912_v28 }
  0x38   :  { %666 = vmatpush3.bf16.msk.msra.mxu0 %vm611_vm9, %v817_v27  ;;  %vm212_vm3 = vmand %vm178_vm8, %vm208_vm11  ;;  %v58_v61 = vmul.f32 1.442695, %v56_v57  ;;  %v64_v62 = vmul.f32 1.442695, %v62_v58  ;;  %v86_v3 = vsub.f32 %v888_v18, %v916_v30  ;;  %v93_v5 = vsub.f32 %v881_v17, %v912_v28 }
  0x39   :  { %vm951_vm0 = vmpackc.low %vm179_vm15, %vm212_vm3  ;;  %685 = vmatprep.subr.bf16.mxu0 %v813_v1  ;;  %v60_v0 = vmul.f32 1.442695, %v57_v59  ;;  %v66_v2 = vmul.f32 1.442695, %v63_v60  ;;  %v87_v4 = vmul.f32 1.442695, %v85_v63  ;;  %v94_v10 = vsub.f32 %v890_v19, %v916_v30 }
  0x3a   :  { %vm961_vm5 = vmxor %vm936_vm13, %vm815_vm6  ;;  %660 = vmatpush3.bf16.msk.msra.mxu1 %vm951_vm0, %v817_v27  ;;  %721 = vpow2.f32 %v58_v61  ;;  %v89_v7 = vmul.f32 1.442695, %v86_v3  ;;  %v95_v14 = vmul.f32 1.442695, %v93_v5  ;;  %v41_v3 = vld [vmem:[#allocation5] sm:$0xff] }
  0x3b   :  { %vm971_vm10 = vmxor %vm946_vm14, %vm815_vm6  ;;  %668 = vmatmul.mubr.msk.bf16.vlgmr.msra.gmra.mrb[0].mxu0 %vm286_vm4, %v167_v46  ;;  %671 = vmatprep.subr.bf16.mxu1 %v813_v1  ;;  %vm1142_vm6 = vmmov 0   ;;  %v995_v53 = vsel %vm961_vm5, 1.0, %v813_v1  ;;  %723 = vpow2.f32 %v64_v62  ;;  %v97_v16 = vmul.f32 1.442695, %v94_v10 }
  0x3c   :  { %686 = vmatpush3.bf16.msk.msra.mxu0 %vm896_vm12, %v817_v27  ;;  %689 = vmatprep.mubr.msk.bf16.mxu0 %vm1142_vm6, %v813_v1  ;;  %v1000_v54 = vsel %vm971_vm10, 1.0, %v813_v1  ;;  %vm621_vm11 = vmpackc.low %vm971_vm10, %vm961_vm5  ;;  %725 = vpow2.f32 %v60_v0  ;;  %vm72_vm14 = vcmp.eq.s32.totalorder %v41_v3, 1  ;;  %vm103_vm9 = vcmp.eq.s32.totalorder %v41_v3, 2 }
  0x3d   :  { %662 = vmatmul.mubr.msk.bf16.vlgmr.msra.gmra.mrb[0].mxu1 %vm241_vm7, %v240_v48  ;;  %687 = vmatprep.subr.bf16.mxu0 %v813_v1  ;;  %v339_v56 = vpack.c.bf16 %v1000_v54, %v995_v53  ;;  %727 = vpow2.f32 %v66_v2 }
  0x3e   :  { %672 = vmatpush3.bf16.msk.msra.mxu1 %vm896_vm12, %v817_v27  ;;  %675 = vmatprep.mubr.msk.bf16.mxu1 %vm1142_vm6, %v813_v1  ;;  %vm635_vm12 = vmpackc.low %vm448_vm1, %vm447_vm2  ;;  %vm1144_vm1 = vcmp.gt.f32.partialorder %v918_v32, %v916_v30  ;;  %729 = vpow2.f32 %v87_v4  ;;  %v42_v4 = vld [vmem:[#allocation5 + $0x8] sm:$0xff]  ;;  %vm45_vm2 = vcmp.eq.s32.totalorder %v41_v3, 0 }
  0x3f   :  { %673 = vmatprep.subr.bf16.mxu1 %v813_v1  ;;  %v1064_v11 = vsel %vm1144_vm1, %v918_v32, %v916_v30  ;;  %731 = vpow2.f32 %v89_v7  ;;  %vm46_vm13 = vcmp.eq.s32.totalorder %v42_v4, 0  ;;  %vm73_vm8 = vcmp.eq.s32.totalorder %v42_v4, 1 }
  0x40   :  { %688 = vmatpush3.bf16.msk.msra.mxu0 %vm951_vm0, %v817_v27  ;;  %v117_v18 = vsub.f32 %v916_v30, %v1064_v11  ;;  %733 = vpow2.f32 %v95_v14  ;;  %v125_v25 = vsub.f32 %v918_v32, %v1064_v11  ;;  %v47_v7 = vsel %vm45_vm2, %v864_v8, 0.0 }
  0x41   :  { %693 = vmatprep.subr.bf16.mxu0 %v813_v1  ;;  %735 = vpow2.f32 %v97_v16  ;;  %v48_v10 = vsel %vm46_vm13, %v866_v9, 0.0  ;;  %v74_v14 = vsel %vm72_vm14, %v868_v12, 0.0  ;;  %vm104_vm15 = vcmp.eq.s32.totalorder %v42_v4, 2 }
  0x42   :  { %674 = vmatpush3.bf16.msk.msra.mxu1 %vm951_vm0, %v817_v27  ;;  %vm1143_vm0 = vcmp.gt.f32.partialorder %v905_v26, %v912_v28  ;;  %v120_v24 = vmul.f32 1.442695, %v117_v18  ;;  %v128_v30 = vmul.f32 1.442695, %v125_v25  ;;  %v76_v18 = vadd.f32 %v74_v14, %v47_v7 }
  0x43   :  { %690 = vmatmul.mubr.msk.bf16.vlgmr.msra.gmra.mrb[4].mxu0 %vm241_vm7, %v453_v55  ;;  %679 = vmatprep.subr.bf16.mxu1 %v813_v1  ;;  %v1055_v6 = vsel %vm1143_vm0, %v905_v26, %v912_v28  ;;  %vm135_vm10 = vcmp.eq.s32.totalorder %v42_v4, 3 }
  0x44   :  { %694 = vmatpush3.bf16.msk.msra.mxu0 %vm635_vm12, %v817_v27  ;;  %695 = vmatprep.mubr.msk.bf16.mxu0 %vm1142_vm6, %v813_v1  ;;  %v116_v15 = vsub.f32 %v912_v28, %v1055_v6  ;;  %v124_v21 = vsub.f32 %v905_v26, %v1055_v6  ;;  %v722_v22 = vpop.eup %721 }
  0x45   :  { %676 = vmatmul.mubr.msk.bf16.vlgmr.msra.gmra.mrb[4].mxu1 %vm241_vm7, %v339_v56  ;;  %v724_v23 = vpop.eup %723 }
  0x46   :  { %680 = vmatpush3.bf16.msk.msra.mxu1 %vm621_vm11, %v817_v27  ;;  %681 = vmatprep.mubr.msk.bf16.mxu1 %vm1142_vm6, %v813_v1  ;;  %v118_v20 = vmul.f32 1.442695, %v116_v15  ;;  %v726_v27 = vpop.eup %725  ;;  %v126_v28 = vmul.f32 1.442695, %v124_v21  ;;  %v68_v31 = vadd.f32 %v724_v23, %v722_v22  ;;  %v75_v15 = vsel %vm73_vm8, %v870_v13, 0.0 }
  0x47   :  { %v728_v29 = vpop.eup %727  ;;  %v105_v22 = vsel %vm103_vm9, %v881_v17, 0.0  ;;  %v106_v23 = vsel %vm104_vm15, %v890_v19, 0.0 }
  0x48   :  { %737 = vpow2.f32 %v118_v20  ;;  %v730_v33 = vpop.eup %729  ;;  %v69_v34 = vadd.f32 %v728_v29, %v726_v27  ;;  %v77_v20 = vadd.f32 %v75_v15, %v48_v10  ;;  %v107_v29 = vadd.f32 %v105_v22, %v76_v18 }
  0x49   :  { %739 = vpow2.f32 %v120_v24  ;;  %v732_v35 = vpop.eup %731  ;;  %v91_v36 = vmul.f32 %v730_v33, %v68_v31 }
  0x4a   :  { %741 = vpow2.f32 %v126_v28  ;;  %v734_v37 = vpop.eup %733  ;;  %v92_v38 = vmul.f32 %v732_v35, %v69_v34  ;;  %v108_v28 = vadd.f32 %v106_v23, %v77_v20 }
  0x4b   :  { %743 = vpow2.f32 %v128_v30  ;;  %v736_v39 = vpop.eup %735  ;;  %v99_v40 = vadd.f32 %v734_v37, %v91_v36 }
  0x4c   :  { %v100_v42 = vadd.f32 %v736_v39, %v92_v38  ;;  %v137_v39 = vsel %vm135_vm10, %v918_v32, 0.0 }
  0x4f   :  { %696 = vmatmul.mubr.msk.bf16.vlgmr.msra.gmra.mrb[4].mxu0 %vm286_vm4, %v167_v46 }
  0x51   :  { %682 = vmatmul.mubr.msk.bf16.vlgmr.msra.gmra.mrb[4].mxu1 %vm286_vm4, %v167_v46  ;;  %vm134_vm4 = vcmp.eq.s32.totalorder %v41_v3, 3 }
  0x52   :  { %v738_v41 = vpop.eup %737  ;;  %v136_v31 = vsel %vm134_vm4, %v905_v26, 0.0 }
  0x53   :  { %v740_v45 = vpop.eup %739  ;;  %v122_v48 = vmul.f32 %v738_v41, %v99_v40 }
  0x54   :  { %v742_v49 = vpop.eup %741  ;;  %v123_v59 = vmul.f32 %v740_v45, %v100_v42 }
  0x55   :  { %v744_v60 = vpop.eup %743  ;;  %v130_v0 = vadd.f32 %v742_v49, %v122_v48 }
  0x56   :  { %v131_v2 = vadd.f32 %v744_v60, %v123_v59  ;;  %v139_v59 = vadd.f32 %v137_v39, %v108_v28 }
  0x57   :  { %745 = vlog2.f32 %v130_v0 }
  0x58   :  { %747 = vlog2.f32 %v131_v2 }
  0x61   :  { %v746_v21 = vpop.eup %745 }
  0x62   :  { %v748_v9 = vpop.eup %747  ;;  %v141_v33 = vmul.f32 0.6931472, %v746_v21 }
  0x63   :  { %v143_v40 = vmul.f32 0.6931472, %v748_v9 }
 0x10e   :  { %v324_v46 = vpop.f32.mrb[0].mxu0 }
 0x10f   :  { %v669_v47 = vpop.f32.mrb[1].mxu0 }
 0x110   :  { %v279_v50 = vpop.f32.mrb[0].mxu1  ;;  %v327_v55 = vpop.f32.mrb[2].mxu0 }
 0x111   :  { %v325_v56 = vadd.f32 %v324_v46, %v279_v50  ;;  %v663_v57 = vpop.f32.mrb[1].mxu1  ;;  %v670_v58 = vpop.f32.mrb[3].mxu0 }
 0x112   :  { %v282_v61 = vpop.f32.mrb[2].mxu1 }
 0x113   :  { %v328_v62 = vadd.f32 %v327_v55, %v282_v61  ;;  %v664_v63 = vpop.f32.mrb[3].mxu1  ;;  %v331_v5 = vsub.f32 %v325_v56, %v941_v43  ;;  %v138_v55 = vadd.f32 %v136_v31, %v107_v29  ;;  %v144_v56 = vadd.f32 %v141_v33, %v1055_v6 }
 0x114   :  { %v145_v61 = vadd.f32 %v143_v40, %v1064_v11 }
 0x115   :  { %v332_v16 = vsub.f32 %v328_v62, %v944_v44  ;;  %vm333_vm3 = vcmp.ge.f32.partialorder %v331_v5, 1.0  ;;  %v146_v63 = vsub.f32 %v144_v56, %v138_v55 }
 0x116   :  { %v614_v12 = vsel %vm333_vm3, 1.0, %v813_v1  ;;  %v147_v2 = vsub.f32 %v145_v61, %v139_v59 }
 0x117   :  { %vm334_vm5 = vcmp.ge.f32.partialorder %v332_v16, 1.0  ;;  %v549_v36 = vmul.f32 %v979_v51, %v614_v12  ;;  %v435_v45 = vmul.f32 %v614_v12, %v995_v53 }
 0x118   :  { %v615_v17 = vsel %vm334_vm5, 1.0, %v813_v1 }
 0x119   :  { %v550_v46 = vmul.f32 %v983_v52, %v615_v17  ;;  %v436_v57 = vmul.f32 %v615_v17, %v1000_v54 }
 0x122   :  { %v532_v8 = vpop.f32.mrb[4].mxu0 }
 0x123   :  { %v539_v13 = vsub.f32 %v532_v8, %v979_v51  ;;  %v697_v24 = vpop.f32.mrb[5].mxu0 }
 0x124   :  { %v535_v25 = vpop.f32.mrb[6].mxu0  ;;  %v418_v27 = vpop.f32.mrb[4].mxu1 }
 0x125   :  { %vm541_vm6 = vcmp.ge.f32.partialorder %v539_v13, 1.0  ;;  %v540_v19 = vsub.f32 %v535_v25, %v983_v52  ;;  %v425_v30 = vsub.f32 %v418_v27, %v995_v53  ;;  %v698_v34 = vpop.f32.mrb[7].mxu0  ;;  %v683_v35 = vpop.f32.mrb[5].mxu1 }
 0x126   :  { %v638_v37 = vsel %vm541_vm6, 1.0, %v813_v1  ;;  %v421_v38 = vpop.f32.mrb[6].mxu1 }
 0x127   :  { %v547_v26 = vmul.f32 %v638_v37, %v941_v43  ;;  %vm542_vm12 = vcmp.ge.f32.partialorder %v540_v19, 1.0  ;;  %vm427_vm11 = vcmp.ge.f32.partialorder %v425_v30, 1.0  ;;  %v426_v41 = vsub.f32 %v421_v38, %v1000_v54  ;;  %v684_v42 = vpop.f32.mrb[7].mxu1 }
 0x128   :  { %v639_v51 = vsel %vm542_vm12, 1.0, %v813_v1  ;;  %v624_v47 = vsel %vm427_vm11, 1.0, %v813_v1 }
 0x129   :  { %v551_v48 = vadd.f32 %v549_v36, %v547_v26  ;;  %v548_v49 = vmul.f32 %v639_v51, %v944_v44  ;;  %v433_v32 = vmul.f32 %v624_v47, %v941_v43  ;;  %vm428_vm0 = vcmp.ge.f32.partialorder %v426_v41, 1.0 }
 0x12a   :  { %v625_v50 = vsel %vm428_vm0, 1.0, %v813_v1 }
 0x12b   :  { %v552_v53 = vadd.f32 %v550_v46, %v548_v49  ;;  %v437_v58 = vadd.f32 %v435_v45, %v433_v32  ;;  %v434_v52 = vmul.f32 %v625_v50, %v944_v44  ;;  %vm553_vm1 = vcmp.ge.f32.partialorder %v551_v48, 1.0 }
 0x12c   :  { %v640_v54 = vsel %vm553_vm1, 1.0, %v813_v1 }
 0x12d   :  { %vm439_vm2 = vcmp.ge.f32.partialorder %v437_v58, 1.0  ;;  %v438_v60 = vadd.f32 %v436_v57, %v434_v52  ;;  %vm554_vm13 = vcmp.ge.f32.partialorder %v552_v53, 1.0 }
 0x12e   :  { %v626_v43 = vsel %vm439_vm2, 1.0, %v813_v1  ;;  %v641_v44 = vsel %vm554_vm13, 1.0, %v813_v1 }
 0x12f   :  { %v445_v62 = vmax.f32 %v626_v43, 0.0  ;;  %vm440_vm14 = vcmp.ge.f32.partialorder %v438_v60, 1.0 }
 0x130   :  { %v627_v6 = vsel %vm440_vm14, 1.0, %v813_v1 }
 0x131   :  { %v446_v0 = vmax.f32 %v627_v6, 0.0  ;;  %v559_v3 = vmax.f32 %v445_v62, %v640_v54 }
 0x133   :  { %v560_v4 = vmax.f32 %v446_v0, %v641_v44  ;;  %v561_v5 = vmul.f32 %v559_v3, %v146_v63 }
 0x135   :  { %v562_v7 = vmul.f32 %v560_v4, %v147_v2  ;;  %v563_v11 = vsel %vm241_vm7, %v561_v5, 0.0 }
 0x137   :  { %v564_v10 = vsel %vm241_vm7, %v562_v7, 0.0 }
 0x138   :  { %v565_v14 = vadd.f32 %v564_v10, %v563_v11 }
 0x13a   :  { %566 = vadd.xlane.f32.xlu0 %v565_v14 }
 0x1c7   :  { %v567_v15 = vpop.xlane.xlu0 %566 }
 0x1c8   :  { %v568_v16 = vrot.slane %v567_v15, 4 }
 0x1ca   :  { %v569_v18 = vadd.f32 %v568_v16, %v567_v15 }
 0x1cc   :  { %v570_v20 = vrot.slane %v569_v18, 2 }
 0x1ce   :  { %v571_v21 = vadd.f32 %v570_v20, %v569_v18 }
 0x1d0   :  { %v572_v22 = vrot.slane %v571_v21, 1 }
 0x1d2   :  { %v573_v23 = vadd.f32 %v572_v22, %v571_v21 }
 0x1d4   :  { %709 = vpush %v573_v23 }
 0x205   :  { %s710_s1 = spop %709 }
 0x206   :  { %576 = sst [smem:[#allocation7]] %s710_s1 }
 0x207   :  { %802 = shalt.err (!%p799_p4)
}
 0x208   :  { %s818_s13 = smov [#allocation7]  }
 0x209   :  { %584 = dma.smem_to_hbm %s818_s13, 16, %s1125_s2, [#allocation4]  }
 0x20a   :  { %807 = dma.done.wait [#allocation4], 16  }
 0x20b   :  { %808 = vsyncadd [#allocation4], 4294967280 }
 0x20c   :  { %588 = sfence }
 0x20d   :  { %589 = vsyncpa [#allocation3], 1 }
 0x20e   :  { %590 = vsyncpa [#allocation6], 1 }
 0x20f   :  { %591 = vsyncpa [#allocation4], 1 }

</bundles_post_ra>
